<compile_context>
chip_gen: v5e
topology: v5e:2x2
jax: 0.10.0
libtpu: 0.0.40
codegen_flags: <defaults>
</compile_context>

<pallas_src>
import functools

import jax
import jax.numpy as jnp
from jax import lax
from jax.experimental import pallas as pl
from jax.experimental.pallas import tpu as pltpu


# ----------------------------------------------------------------------------
# Pallas kernel: one (batch, row-block) tile per grid step.
# ----------------------------------------------------------------------------
def _bottleneck_kernel(x_ref, xtop_ref, xbot_ref,
                       w1_ref, b1_ref, w2_ref, b2_ref, w3_ref, b3_ref,
                       out_ref):
    _, TH, W, Cin = x_ref.shape
    P = w1_ref.shape[1]
    Cout = w3_ref.shape[1]
    F = (TH + 2) * W                      # rows of the row-padded h1 slab (flattened)

    r = pl.program_id(1)
    n_rows = pl.num_programs(1)

    # ---- conv1 (1x1) + folded-BN bias + relu, fused over [top | tile | bottom]
    x_top = xtop_ref[...].reshape(W, Cin).astype(jnp.bfloat16)
    x_mid = x_ref[...].reshape(TH * W, Cin).astype(jnp.bfloat16)
    x_bot = xbot_ref[...].reshape(W, Cin).astype(jnp.bfloat16)
    x_all = jnp.concatenate([x_top, x_mid, x_bot], axis=0)           # (F, Cin) bf16
    h1 = jnp.dot(x_all, w1_ref[...], preferred_element_type=jnp.float32)
    h1 = jnp.maximum(h1 + b1_ref[...], 0.0)                           # (F, P) f32

    # Row padding of the 3x3 conv: zero the halo rows at the image boundary.
    # Select (jnp.where), not multiply-by-0 -> no NaN/Inf propagation from the
    # clamped duplicate row.
    fidx = lax.broadcasted_iota(jnp.int32, (F, 1), 0)
    keep = ((fidx >= W) | (r > 0)) & ((fidx < (TH + 1) * W) | (r < n_rows - 1))
    h1 = jnp.where(keep, h1, 0.0)

    # ---- conv2 (3x3, stride 1, pad 1) ---------------------------------------
    # Column neighbours via a one-row shift of the flattened slab; positions
    # where the shift crosses an image row (x == 0 / x == W-1) are zeroed,
    # which is exactly the conv's zero column-padding.  All remaining tap reads
    # are W-aligned static slices of the three bf16 slabs.
    # (A pltpu.roll sublane rotate would keep the shift on the idle XLU slot;
    #  slice+concat is used here for lowering robustness across generations.)
    col = fidx % W
    zrow = jnp.zeros((1, P), jnp.float32)
    h1_l = jnp.concatenate([zrow, h1[:F - 1]], axis=0)                # h1[., x-1]
    h1_r = jnp.concatenate([h1[1:], zrow], axis=0)                    # h1[., x+1]
    h1_l = jnp.where(col != 0, h1_l, 0.0)
    h1_r = jnp.where(col != W - 1, h1_r, 0.0)

    slabs = (h1_l.astype(jnp.bfloat16),        # kx = 0
             h1.astype(jnp.bfloat16),          # kx = 1
             h1_r.astype(jnp.bfloat16))        # kx = 2

    if P >= 256:
        # Large planes: 9 accumulated full-width (TH*W, P) @ (P, P) matmuls —
        # no im2col slab is ever materialised.  (On v7x consecutive dots into
        # the same f32 accumulator use the MRB in-place accumulate path.)
        h2 = jnp.zeros((TH * W, P), jnp.float32)
        for ky in range(3):
            for kx in range(3):
                tap = slabs[kx][ky * W:(ky + TH) * W]                 # (TH*W, P) bf16
                w_tap = w2_ref[pl.ds((ky * 3 + kx) * P, P), :]
                h2 = h2 + jnp.dot(tap, w_tap, preferred_element_type=jnp.float32)
    else:
        # Small planes: bf16-only deep-K im2col -> single (TH*W, 9P) matmul,
        # which amortises MXU fill better when K = P would underfill the MXU.
        taps = [slabs[kx][ky * W:(ky + TH) * W]
                for ky in range(3) for kx in range(3)]
        patches = jnp.concatenate(taps, axis=-1)                       # (TH*W, 9P) bf16
        h2 = jnp.dot(patches, w2_ref[...], preferred_element_type=jnp.float32)
    h2 = jnp.maximum(h2 + b2_ref[...], 0.0)

    # ---- conv3 (1x1) + bias + residual add + relu ---------------------------
    h3 = jnp.dot(h2.astype(jnp.bfloat16), w3_ref[...],
                 preferred_element_type=jnp.float32)
    residual = x_ref[...].reshape(TH * W, Cin).astype(jnp.float32)     # re-read here only
    out = jnp.maximum(h3 + b3_ref[...] + residual, 0.0)
    out_ref[...] = out.reshape(1, TH, W, Cout).astype(out_ref.dtype)


# ----------------------------------------------------------------------------
# Generation-aware VMEM budgeting.
# ----------------------------------------------------------------------------
def _vmem_capacity_bytes():
    try:
        return int(pltpu.get_tpu_info().vmem_capacity_bytes)
    except Exception:
        return 128 * 2**20            # conservative v5e/v6e default


def _working_set_bytes(th, W, cin, planes, cout):
    p = planes
    # fixed, grid-resident: double-buffered bf16 weights + f32 biases
    fixed = 4 * (cin * p + 9 * p * p + p * cout) + 8 * (2 * p + cout)
    # per image row: f32 in/out tiles (double-buffered) + bf16/f32 value
    # intermediates (conv1 operand, h1 + 2 shifted slabs, patches, h2/h3, residual)
    per_row = W * (12 * cin + 12 * cout + 36 * p)
    return fixed + th * per_row


def _pick_row_block(H, W, cin, planes, cout, budget_bytes):
    best = 1
    for th in range(1, H + 1):
        if H % th == 0 and _working_set_bytes(th, W, cin, planes, cout) <= budget_bytes:
            best = th
    return best


# ----------------------------------------------------------------------------
# Wrapper: NHWC in / NHWC out (keep activations NHWC end-to-end).
# ----------------------------------------------------------------------------
@functools.partial(jax.jit, static_argnames=("row_block",))
def bottleneck_forward_nhwc(x, params, *, row_block=None):
    N, H, W, Cin = x.shape
    w1, w2, w3 = params["w1"], params["w2"], params["w3"]
    b1, b2, b3 = params["b1"], params["b2"], params["b3"]
    P = w1.shape[1]
    Cout = w3.shape[1]
    assert Cin == Cout, "residual add requires inplanes == planes * expansion"
    assert w2.shape == (9 * P, P)

    # Generation-aware budgets (128 MiB per core on v5e/v6e, 64 MiB on v7x).
    cap = _vmem_capacity_bytes()
    if row_block is None:
        row_block = _pick_row_block(H, W, Cin, P, Cout, budget_bytes=cap // 3)
    assert H % row_block == 0, "row_block must divide H"
    TH = row_block
    n_row_blocks = H // TH

    est = _working_set_bytes(TH, W, Cin, P, Cout)
    # leave headroom for compiler-internal scratch: never request > 80% of VMEM
    upper = max(int(cap * 0.8), 32 * 2**20)
    vmem_limit = int(min(max(2 * est, 32 * 2**20), upper))

    def wspec(shape):
        # TODO(synk): constant index_map -> single-buffering these weight inputs
        # (pipeline_mode=pl.Buffered(1)) would halve their resident VMEM.
        return pl.BlockSpec(shape, lambda n, r: (0,) * len(shape))

    return pl.pallas_call(
        _bottleneck_kernel,
        out_shape=jax.ShapeDtypeStruct((N, H, W, Cout), x.dtype),
        grid=(N, n_row_blocks),
        in_specs=[
            # main row block of x
            pl.BlockSpec((1, TH, W, Cin), lambda n, r: (n, r, 0, 0)),
            # one-row halo above / below (clamped; zeroed in-kernel at the boundary)
            pl.BlockSpec((1, 1, W, Cin),
                         lambda n, r: (n, jnp.maximum(r * TH - 1, 0), 0, 0)),
            pl.BlockSpec((1, 1, W, Cin),
                         lambda n, r: (n, jnp.minimum(r * TH + TH, H - 1), 0, 0)),
            # BN-folded weights (bf16) + biases (f32), resident across the grid
            wspec((Cin, P)), wspec((1, P)),
            wspec((9 * P, P)), wspec((1, P)),
            wspec((P, Cout)), wspec((1, Cout)),
        ],
        out_specs=pl.BlockSpec((1, TH, W, Cout), lambda n, r: (n, r, 0, 0)),
        compiler_params=pltpu.CompilerParams(
            dimension_semantics=("parallel", "parallel"),
            vmem_limit_bytes=vmem_limit),
    )(x, x, x, w1, b1, w2, b2, w3, b3)


def bottleneck_forward_nchw(x_nchw, params, *, row_block=None):
    # Layout plumbing only (matches the PyTorch NCHW convention). Prefer calling
    # the NHWC entry point directly to avoid two extra full-tensor HBM passes.
    x = jnp.transpose(x_nchw, (0, 2, 3, 1))
    y = bottleneck_forward_nhwc(x, params, row_block=row_block)
    return jnp.transpose(y, (0, 3, 1, 2))


# ----------------------------------------------------------------------------
# Deterministic parameter construction + BN folding.
# ----------------------------------------------------------------------------
def make_params(key, inplanes, planes, expansion=4):
    """Raw (unfolded) f32 parameters mirroring the PyTorch module."""
    cout = planes * expansion
    assert cout == inplanes, "residual add requires inplanes == planes * expansion"
    ks = jax.random.split(key, 6)

    def bn(k, c):
        kg, kb, km, kv = jax.random.split(k, 4)
        return dict(
            gamma=jax.random.uniform(kg, (c,), jnp.float32, 0.5, 1.5),
            beta=jax.random.normal(kb, (c,), jnp.float32) * 0.1,
            mean=jax.random.normal(km, (c,), jnp.float32) * 0.1,
            var=jax.random.uniform(kv, (c,), jnp.float32, 0.5, 1.5),
        )

    return dict(
        w1=jax.random.normal(ks[0], (inplanes, planes), jnp.float32) * 0.1,      # 1x1 (Cin, P)
        w2=jax.random.normal(ks[1], (3, 3, planes, planes), jnp.float32) * 0.1,  # 3x3 HWIO
        w3=jax.random.normal(ks[2], (planes, cout), jnp.float32) * 0.1,          # 1x1 (P, Cout)
        bn1=bn(ks[3], planes), bn2=bn(ks[4], planes), bn3=bn(ks[5], cout),
    )


def fold_params(raw, eps=1e-5, matmul_dtype=jnp.bfloat16):
    """Fold eval-mode BN scale into conv weights; keep only a per-channel bias."""
    def fold(w, b):
        scale = b["gamma"] / jnp.sqrt(b["var"] + eps)          # per out-channel
        bias = b["beta"] - b["mean"] * scale
        return (w * scale).astype(matmul_dtype), bias.astype(jnp.float32)

    cin, p = raw["w1"].shape
    cout = raw["w3"].shape[1]
    w1f, b1 = fold(raw["w1"], raw["bn1"])
    w2f, b2 = fold(raw["w2"], raw["bn2"])
    w3f, b3 = fold(raw["w3"], raw["bn3"])
    return dict(
        w1=w1f, b1=b1.reshape(1, p),
        w2=w2f.reshape(9 * p, p), b2=b2.reshape(1, p),         # (ky,kx,cin) row-major
        w3=w3f, b3=b3.reshape(1, cout),
    )


# ----------------------------------------------------------------------------
# Pure-JAX f32 reference (NHWC, unfolded BN) for the correctness check.
# ----------------------------------------------------------------------------
def reference_forward_nhwc(x, raw, eps=1e-5):
    x = x.astype(jnp.float32)
    dn = ("NHWC", "HWIO", "NHWC")
    cin, p = raw["w1"].shape
    cout = raw["w3"].shape[1]

    def bn(h, b):
        scale = (b["gamma"] / jnp.sqrt(b["var"] + eps)).reshape(1, 1, 1, -1)
        bias = (b["beta"] - b["mean"] * b["gamma"] / jnp.sqrt(b["var"] + eps)).reshape(1, 1, 1, -1)
        return h * scale + bias

    h = lax.conv_general_dilated(x, raw["w1"].reshape(1, 1, cin, p), (1, 1), "VALID",
                                 dimension_numbers=dn)
    h = jnp.maximum(bn(h, raw["bn1"]), 0.0)
    h = lax.conv_general_dilated(h, raw["w2"], (1, 1), "SAME", dimension_numbers=dn)
    h = jnp.maximum(bn(h, raw["bn2"]), 0.0)
    h = lax.conv_general_dilated(h, raw["w3"].reshape(1, 1, p, cout), (1, 1), "VALID",
                                 dimension_numbers=dn)
    h = bn(h, raw["bn3"])
    return jnp.maximum(h + x, 0.0)


if __name__ == "__main__":
    key = jax.random.PRNGKey(0)
    k_x, k_p = jax.random.split(key)

    # small shapes consistent with the module: inplanes = planes * expansion
    N, planes, expansion, H, W = 2, 4, 4, 16, 16
    inplanes = planes * expansion                      # 16

    x = jax.random.normal(k_x, (N, H, W, inplanes), jnp.float32)   # NHWC
    raw = make_params(k_p, inplanes, planes, expansion)
    params = fold_params(raw)

    # row_block=8 -> 2 row blocks per image, exercising the halo path
    out = bottleneck_forward_nhwc(x, params, row_block=8)
    out = jax.block_until_ready(out)

    ref = reference_forward_nhwc(x, raw)
    assert out.shape == (N, H, W, inplanes)
    err = jnp.max(jnp.abs(out.astype(jnp.float32) - ref))
    # bf16 MXU inputs with f32 accumulation vs f32 reference -> loosened tolerance
    assert jnp.allclose(out.astype(jnp.float32), ref, atol=2e-2, rtol=2e-2), (
        f"max abs diff {err}")

    print("KERNEL_OK")
</pallas_src>

<mosaic_0001>
module attributes {stable_mosaic.version = 11 : i64} {
  func.func @_bottleneck_kernel(%arg0: i32, %arg1: i32, %arg2: memref<1x8x16x16xf32, #tpu.memory_space<vmem>>, %arg3: memref<1x1x16x16xf32, #tpu.memory_space<vmem>>, %arg4: memref<1x1x16x16xf32, #tpu.memory_space<vmem>>, %arg5: memref<16x4xbf16, #tpu.memory_space<vmem>>, %arg6: memref<1x4xf32, #tpu.memory_space<vmem>>, %arg7: memref<36x4xbf16, #tpu.memory_space<vmem>>, %arg8: memref<1x4xf32, #tpu.memory_space<vmem>>, %arg9: memref<4x16xbf16, #tpu.memory_space<vmem>>, %arg10: memref<1x16xf32, #tpu.memory_space<vmem>>, %arg11: memref<1x8x16x16xf32, #tpu.memory_space<vmem>>) attributes {dimension_semantics = [#tpu.dimension_semantics<parallel>, #tpu.dimension_semantics<parallel>], iteration_bounds = array<i64: 2, 2>, scalar_prefetch = 0 : i64, scratch_operands = 0 : i64, tpu.core_type = #tpu.core_type<tc>, window_params = [{transform_indices = @transform_0, window_bounds = array<i64: 1, 8, 16, 16>}, {transform_indices = @transform_1, window_bounds = array<i64: 1, 1, 16, 16>}, {transform_indices = @transform_2, window_bounds = array<i64: 1, 1, 16, 16>}, {pipeline_mode = #tpu.pipeline_mode<synchronous>, transform_indices = @transform_3, window_bounds = array<i64: 16, 4>}, {pipeline_mode = #tpu.pipeline_mode<synchronous>, transform_indices = @transform_4, window_bounds = array<i64: 1, 4>}, {pipeline_mode = #tpu.pipeline_mode<synchronous>, transform_indices = @transform_5, window_bounds = array<i64: 36, 4>}, {pipeline_mode = #tpu.pipeline_mode<synchronous>, transform_indices = @transform_6, window_bounds = array<i64: 1, 4>}, {pipeline_mode = #tpu.pipeline_mode<synchronous>, transform_indices = @transform_7, window_bounds = array<i64: 4, 16>}, {pipeline_mode = #tpu.pipeline_mode<synchronous>, transform_indices = @transform_8, window_bounds = array<i64: 1, 16>}, {transform_indices = @transform_9, window_bounds = array<i64: 1, 8, 16, 16>}]} {
    %c0 = arith.constant 0 : index
    %c0_0 = arith.constant 0 : index
    %c0_1 = arith.constant 0 : index
    %c0_2 = arith.constant 0 : index
    %0 = vector.load %arg3[%c0, %c0_0, %c0_1, %c0_2] : memref<1x1x16x16xf32, #tpu.memory_space<vmem>>, vector<1x1x16x16xf32>
    %1 = vector.shape_cast %0 : vector<1x1x16x16xf32> to vector<16x16xf32>
    %2 = arith.truncf %1 : vector<16x16xf32> to vector<16x16xbf16>
    %c0_3 = arith.constant 0 : index
    %c0_4 = arith.constant 0 : index
    %c0_5 = arith.constant 0 : index
    %c0_6 = arith.constant 0 : index
    %3 = vector.load %arg2[%c0_3, %c0_4, %c0_5, %c0_6] : memref<1x8x16x16xf32, #tpu.memory_space<vmem>>, vector<1x8x16x16xf32>
    %4 = vector.shape_cast %3 : vector<1x8x16x16xf32> to vector<128x16xf32>
    %5 = arith.truncf %4 : vector<128x16xf32> to vector<128x16xbf16>
    %c0_7 = arith.constant 0 : index
    %c0_8 = arith.constant 0 : index
    %c0_9 = arith.constant 0 : index
    %c0_10 = arith.constant 0 : index
    %6 = vector.load %arg4[%c0_7, %c0_8, %c0_9, %c0_10] : memref<1x1x16x16xf32, #tpu.memory_space<vmem>>, vector<1x1x16x16xf32>
    %7 = vector.shape_cast %6 : vector<1x1x16x16xf32> to vector<16x16xf32>
    %8 = arith.truncf %7 : vector<16x16xf32> to vector<16x16xbf16>
    %9 = tpu.concatenate %2, %5, %8 in 0 : vector<16x16xbf16>, vector<128x16xbf16>, vector<16x16xbf16> -> vector<160x16xbf16>
    %c0_11 = arith.constant 0 : index
    %c0_12 = arith.constant 0 : index
    %10 = vector.load %arg5[%c0_11, %c0_12] : memref<16x4xbf16, #tpu.memory_space<vmem>>, vector<16x4xbf16>
    %cst = arith.constant dense<0.000000e+00> : vector<160x4xf32>
    %11 = tpu.matmul %9, %10, %cst {dimension_numbers = #tpu.dot_dimension_numbers<[1], [0], [0], [1], [0, 0, 1, 1], [], []>} : vector<160x16xbf16>, vector<16x4xbf16>, vector<160x4xf32> -> vector<160x4xf32>
    %c0_13 = arith.constant 0 : index
    %c0_14 = arith.constant 0 : index
    %12 = vector.load %arg6[%c0_13, %c0_14] : memref<1x4xf32, #tpu.memory_space<vmem>>, vector<1x4xf32>
    %13 = vector.broadcast %12 : vector<1x4xf32> to vector<160x4xf32>
    %14 = arith.addf %11, %13 : vector<160x4xf32>
    %cst_15 = arith.constant 0.000000e+00 : f32
    %15 = vector.broadcast %cst_15 : f32 to vector<160x4xf32>
    %16 = arith.maximumf %14, %15 : vector<160x4xf32>
    %17 = tpu.iota {dimensions = array<i32: 0>} : vector<160x1xi32>
    %c16_i32 = arith.constant 16 : i32
    %18 = vector.broadcast %c16_i32 : i32 to vector<160x1xi32>
    %19 = arith.cmpi sge, %17, %18 : vector<160x1xi32>
    %c0_i32 = arith.constant 0 : i32
    %20 = arith.cmpi sgt, %arg1, %c0_i32 : i32
    %21 = vector.broadcast %20 : i1 to vector<160x1xi1>
    %22 = arith.ori %19, %21 : vector<160x1xi1>
    %c144_i32 = arith.constant 144 : i32
    %23 = vector.broadcast %c144_i32 : i32 to vector<160x1xi32>
    %24 = arith.cmpi slt, %17, %23 : vector<160x1xi32>
    %c1_i32 = arith.constant 1 : i32
    %25 = arith.cmpi slt, %arg1, %c1_i32 : i32
    %26 = vector.broadcast %25 : i1 to vector<160x1xi1>
    %27 = arith.ori %24, %26 : vector<160x1xi1>
    %28 = arith.andi %22, %27 : vector<160x1xi1>
    %cst_16 = arith.constant 0.000000e+00 : f32
    %29 = vector.shape_cast %28 : vector<160x1xi1> to vector<160x1xi1>
    %30 = vector.broadcast %29 : vector<160x1xi1> to vector<160x4xi1>
    %31 = vector.broadcast %cst_16 : f32 to vector<160x4xf32>
    %32 = arith.select %30, %16, %31 : vector<160x4xi1>, vector<160x4xf32>
    %c16_i32_17 = arith.constant 16 : i32
    %c0_i32_18 = arith.constant 0 : i32
    %33 = arith.cmpi eq, %c16_i32_17, %c0_i32_18 : i32
    %c1_i32_19 = arith.constant 1 : i32
    %34 = arith.select %33, %c1_i32_19, %c16_i32_17 : i32
    %35 = vector.broadcast %34 : i32 to vector<160x1xi32>
    %36 = arith.remsi %17, %35 : vector<160x1xi32>
    %c0_i32_20 = arith.constant 0 : i32
    %37 = vector.broadcast %c0_i32_20 : i32 to vector<160x1xi32>
    %38 = arith.cmpi ne, %36, %37 : vector<160x1xi32>
    %c0_i32_21 = arith.constant 0 : i32
    %39 = vector.broadcast %c0_i32_21 : i32 to vector<160x1xi32>
    %40 = arith.cmpi slt, %36, %39 : vector<160x1xi32>
    %c0_i32_22 = arith.constant 0 : i32
    %41 = arith.cmpi slt, %34, %c0_i32_22 : i32
    %42 = vector.broadcast %41 : i1 to vector<160x1xi1>
    %43 = vector.broadcast %42 : vector<160x1xi1> to vector<160x1xi1>
    %44 = arith.xori %40, %43 : vector<160x1xi1>
    %45 = arith.andi %44, %38 : vector<160x1xi1>
    %46 = vector.broadcast %34 : i32 to vector<160x1xi32>
    %47 = arith.addi %36, %46 : vector<160x1xi32>
    %48 = arith.select %45, %47, %36 : vector<160x1xi1>, vector<160x1xi32>
    %cst_23 = arith.constant 0.000000e+00 : f32
    %49 = vector.broadcast %cst_23 : f32 to vector<1x4xf32>
    %50 = vector.extract_strided_slice %32 {offsets = [0, 0], sizes = [159, 4], strides = [1, 1]} : vector<160x4xf32> to vector<159x4xf32>
    %51 = tpu.concatenate %49, %50 in 0 : vector<1x4xf32>, vector<159x4xf32> -> vector<160x4xf32>
    %52 = vector.extract_strided_slice %32 {offsets = [1, 0], sizes = [159, 4], strides = [1, 1]} : vector<160x4xf32> to vector<159x4xf32>
    %53 = tpu.concatenate %52, %49 in 0 : vector<159x4xf32>, vector<1x4xf32> -> vector<160x4xf32>
    %c0_i32_24 = arith.constant 0 : i32
    %54 = vector.broadcast %c0_i32_24 : i32 to vector<160x1xi32>
    %55 = arith.cmpi ne, %48, %54 : vector<160x1xi32>
    %cst_25 = arith.constant 0.000000e+00 : f32
    %56 = vector.shape_cast %55 : vector<160x1xi1> to vector<160x1xi1>
    %57 = vector.broadcast %56 : vector<160x1xi1> to vector<160x4xi1>
    %58 = vector.broadcast %cst_25 : f32 to vector<160x4xf32>
    %59 = arith.select %57, %51, %58 : vector<160x4xi1>, vector<160x4xf32>
    %c15_i32 = arith.constant 15 : i32
    %60 = vector.broadcast %c15_i32 : i32 to vector<160x1xi32>
    %61 = arith.cmpi ne, %48, %60 : vector<160x1xi32>
    %cst_26 = arith.constant 0.000000e+00 : f32
    %62 = vector.shape_cast %61 : vector<160x1xi1> to vector<160x1xi1>
    %63 = vector.broadcast %62 : vector<160x1xi1> to vector<160x4xi1>
    %64 = vector.broadcast %cst_26 : f32 to vector<160x4xf32>
    %65 = arith.select %63, %53, %64 : vector<160x4xi1>, vector<160x4xf32>
    %66 = arith.truncf %59 : vector<160x4xf32> to vector<160x4xbf16>
    %67 = arith.truncf %32 : vector<160x4xf32> to vector<160x4xbf16>
    %68 = arith.truncf %65 : vector<160x4xf32> to vector<160x4xbf16>
    %69 = vector.extract_strided_slice %66 {offsets = [0, 0], sizes = [128, 4], strides = [1, 1]} : vector<160x4xbf16> to vector<128x4xbf16>
    %70 = vector.extract_strided_slice %67 {offsets = [0, 0], sizes = [128, 4], strides = [1, 1]} : vector<160x4xbf16> to vector<128x4xbf16>
    %71 = vector.extract_strided_slice %68 {offsets = [0, 0], sizes = [128, 4], strides = [1, 1]} : vector<160x4xbf16> to vector<128x4xbf16>
    %72 = vector.extract_strided_slice %66 {offsets = [16, 0], sizes = [128, 4], strides = [1, 1]} : vector<160x4xbf16> to vector<128x4xbf16>
    %73 = vector.extract_strided_slice %67 {offsets = [16, 0], sizes = [128, 4], strides = [1, 1]} : vector<160x4xbf16> to vector<128x4xbf16>
    %74 = vector.extract_strided_slice %68 {offsets = [16, 0], sizes = [128, 4], strides = [1, 1]} : vector<160x4xbf16> to vector<128x4xbf16>
    %75 = vector.extract_strided_slice %66 {offsets = [32, 0], sizes = [128, 4], strides = [1, 1]} : vector<160x4xbf16> to vector<128x4xbf16>
    %76 = vector.extract_strided_slice %67 {offsets = [32, 0], sizes = [128, 4], strides = [1, 1]} : vector<160x4xbf16> to vector<128x4xbf16>
    %77 = vector.extract_strided_slice %68 {offsets = [32, 0], sizes = [128, 4], strides = [1, 1]} : vector<160x4xbf16> to vector<128x4xbf16>
    %78 = tpu.concatenate %69, %70, %71, %72, %73, %74, %75, %76, %77 in 1 : vector<128x4xbf16>, vector<128x4xbf16>, vector<128x4xbf16>, vector<128x4xbf16>, vector<128x4xbf16>, vector<128x4xbf16>, vector<128x4xbf16>, vector<128x4xbf16>, vector<128x4xbf16> -> vector<128x36xbf16>
    %c0_27 = arith.constant 0 : index
    %c0_28 = arith.constant 0 : index
    %79 = vector.load %arg7[%c0_27, %c0_28] : memref<36x4xbf16, #tpu.memory_space<vmem>>, vector<36x4xbf16>
    %cst_29 = arith.constant dense<0.000000e+00> : vector<128x4xf32>
    %80 = tpu.matmul %78, %79, %cst_29 {dimension_numbers = #tpu.dot_dimension_numbers<[1], [0], [0], [1], [0, 0, 1, 1], [], []>} : vector<128x36xbf16>, vector<36x4xbf16>, vector<128x4xf32> -> vector<128x4xf32>
    %c0_30 = arith.constant 0 : index
    %c0_31 = arith.constant 0 : index
    %81 = vector.load %arg8[%c0_30, %c0_31] : memref<1x4xf32, #tpu.memory_space<vmem>>, vector<1x4xf32>
    %82 = vector.broadcast %81 : vector<1x4xf32> to vector<128x4xf32>
    %83 = arith.addf %80, %82 : vector<128x4xf32>
    %cst_32 = arith.constant 0.000000e+00 : f32
    %84 = vector.broadcast %cst_32 : f32 to vector<128x4xf32>
    %85 = arith.maximumf %83, %84 : vector<128x4xf32>
    %86 = arith.truncf %85 : vector<128x4xf32> to vector<128x4xbf16>
    %c0_33 = arith.constant 0 : index
    %c0_34 = arith.constant 0 : index
    %87 = vector.load %arg9[%c0_33, %c0_34] : memref<4x16xbf16, #tpu.memory_space<vmem>>, vector<4x16xbf16>
    %cst_35 = arith.constant dense<0.000000e+00> : vector<128x16xf32>
    %88 = tpu.matmul %86, %87, %cst_35 {dimension_numbers = #tpu.dot_dimension_numbers<[1], [0], [0], [1], [0, 0, 1, 1], [], []>} : vector<128x4xbf16>, vector<4x16xbf16>, vector<128x16xf32> -> vector<128x16xf32>
    %c0_36 = arith.constant 0 : index
    %c0_37 = arith.constant 0 : index
    %c0_38 = arith.constant 0 : index
    %c0_39 = arith.constant 0 : index
    %89 = vector.load %arg2[%c0_36, %c0_37, %c0_38, %c0_39] : memref<1x8x16x16xf32, #tpu.memory_space<vmem>>, vector<1x8x16x16xf32>
    %90 = vector.shape_cast %89 : vector<1x8x16x16xf32> to vector<128x16xf32>
    %c0_40 = arith.constant 0 : index
    %c0_41 = arith.constant 0 : index
    %91 = vector.load %arg10[%c0_40, %c0_41] : memref<1x16xf32, #tpu.memory_space<vmem>>, vector<1x16xf32>
    %92 = vector.broadcast %91 : vector<1x16xf32> to vector<128x16xf32>
    %93 = arith.addf %88, %92 : vector<128x16xf32>
    %94 = arith.addf %93, %90 : vector<128x16xf32>
    %cst_42 = arith.constant 0.000000e+00 : f32
    %95 = vector.broadcast %cst_42 : f32 to vector<128x16xf32>
    %96 = arith.maximumf %94, %95 : vector<128x16xf32>
    %97 = vector.shape_cast %96 : vector<128x16xf32> to vector<1x8x16x16xf32>
    %c0_43 = arith.constant 0 : index
    %c0_44 = arith.constant 0 : index
    %c0_45 = arith.constant 0 : index
    %c0_46 = arith.constant 0 : index
    %98 = vector.load %arg11[%c0_43, %c0_44, %c0_45, %c0_46] : memref<1x8x16x16xf32, #tpu.memory_space<vmem>>, vector<1x8x16x16xf32>
    tpu.vector_store %arg11[%c0_43, %c0_44, %c0_45, %c0_46], %97 {strides = array<i32>} : memref<1x8x16x16xf32, #tpu.memory_space<vmem>>, vector<1x8x16x16xf32>,
    return
  }
  func.func @transform_0(%arg0: i32, %arg1: i32) -> (i32, i32, i32, i32) {
    %c0_i32 = arith.constant 0 : i32
    %c0_i32_0 = arith.constant 0 : i32
    %c0_i32_1 = arith.constant 0 : i32
    return %arg0, %arg1, %c0_i32, %c0_i32_0 : i32, i32, i32, i32
  }
  func.func @transform_1(%arg0: i32, %arg1: i32) -> (i32, i32, i32, i32) {
    %c8_i32 = arith.constant 8 : i32
    %0 = arith.muli %arg1, %c8_i32 : i32
    %c1_i32 = arith.constant 1 : i32
    %1 = arith.subi %0, %c1_i32 : i32
    %c0_i32 = arith.constant 0 : i32
    %2 = arith.maxsi %1, %c0_i32 : i32
    %c0_i32_0 = arith.constant 0 : i32
    %c0_i32_1 = arith.constant 0 : i32
    %c0_i32_2 = arith.constant 0 : i32
    return %arg0, %2, %c0_i32_0, %c0_i32_1 : i32, i32, i32, i32
  }
  func.func @transform_2(%arg0: i32, %arg1: i32) -> (i32, i32, i32, i32) {
    %c8_i32 = arith.constant 8 : i32
    %0 = arith.muli %arg1, %c8_i32 : i32
    %c8_i32_0 = arith.constant 8 : i32
    %1 = arith.addi %0, %c8_i32_0 : i32
    %c15_i32 = arith.constant 15 : i32
    %2 = arith.minsi %1, %c15_i32 : i32
    %c0_i32 = arith.constant 0 : i32
    %c0_i32_1 = arith.constant 0 : i32
    %c0_i32_2 = arith.constant 0 : i32
    return %arg0, %2, %c0_i32, %c0_i32_1 : i32, i32, i32, i32
  }
  func.func @transform_3(%arg0: i32, %arg1: i32) -> (i32, i32) {
    %c0_i32 = arith.constant 0 : i32
    %c0_i32_0 = arith.constant 0 : i32
    %c0_i32_1 = arith.constant 0 : i32
    return %c0_i32, %c0_i32_0 : i32, i32
  }
  func.func @transform_4(%arg0: i32, %arg1: i32) -> (i32, i32) {
    %c0_i32 = arith.constant 0 : i32
    %c0_i32_0 = arith.constant 0 : i32
    %c0_i32_1 = arith.constant 0 : i32
    return %c0_i32, %c0_i32_0 : i32, i32
  }
  func.func @transform_5(%arg0: i32, %arg1: i32) -> (i32, i32) {
    %c0_i32 = arith.constant 0 : i32
    %c0_i32_0 = arith.constant 0 : i32
    %c0_i32_1 = arith.constant 0 : i32
    return %c0_i32, %c0_i32_0 : i32, i32
  }
  func.func @transform_6(%arg0: i32, %arg1: i32) -> (i32, i32) {
    %c0_i32 = arith.constant 0 : i32
    %c0_i32_0 = arith.constant 0 : i32
    %c0_i32_1 = arith.constant 0 : i32
    return %c0_i32, %c0_i32_0 : i32, i32
  }
  func.func @transform_7(%arg0: i32, %arg1: i32) -> (i32, i32) {
    %c0_i32 = arith.constant 0 : i32
    %c0_i32_0 = arith.constant 0 : i32
    %c0_i32_1 = arith.constant 0 : i32
    return %c0_i32, %c0_i32_0 : i32, i32
  }
  func.func @transform_8(%arg0: i32, %arg1: i32) -> (i32, i32) {
    %c0_i32 = arith.constant 0 : i32
    %c0_i32_0 = arith.constant 0 : i32
    %c0_i32_1 = arith.constant 0 : i32
    return %c0_i32, %c0_i32_0 : i32, i32
  }
  func.func @transform_9(%arg0: i32, %arg1: i32) -> (i32, i32, i32, i32) {
    %c0_i32 = arith.constant 0 : i32
    %c0_i32_0 = arith.constant 0 : i32
    %c0_i32_1 = arith.constant 0 : i32
    return %arg0, %arg1, %c0_i32, %c0_i32_0 : i32, i32, i32, i32
  }
}

</mosaic_0001>

<bundles_post_ra>
// kernel: bottleneck_forward_nhwc.1
= control target key start
LH: loop header
LB: loop body
LE: loop exit
PB: predicated region body
PF: predicated region fallthrough
CT: control target
= control target key end

     0   :  { %s3867_s0 = inlined_call_operand.hbm [shape: f32[2,16,16,16], index: 0, kind: input, shape index: {}, may-alias: {0,1,2}]   ;;  %s3868_s1 = inlined_call_operand.hbm [shape: f32[2,16,16,16], index: 1, kind: input, shape index: {}, may-alias: {0,1,2}]   ;;  %s3869_s2 = inlined_call_operand.hbm [shape: f32[2,16,16,16], index: 2, kind: input, shape index: {}, may-alias: {0,1,2}]   ;;  %s3870_s3 = inlined_call_operand.vmem [shape: bf16[16,4], index: 3, kind: input, shape index: {}]   ;;  %s3871_s4 = inlined_call_operand.vmem [shape: f32[1,4], index: 4, kind: input, shape index: {}]   ;;  %s3872_s5 = inlined_call_operand.vmem [shape: bf16[36,4], index: 5, kind: input, shape index: {}]   ;;  %s3873_s6 = inlined_call_operand.vmem [shape: f32[1,4], index: 6, kind: input, shape index: {}]   ;;  %s3874_s7 = inlined_call_operand.vmem [shape: bf16[4,16], index: 7, kind: input, shape index: {}]   ;;  %s3875_s8 = inlined_call_operand.vmem [shape: f32[1,16], index: 8, kind: input, shape index: {}]   ;;  %s3876_s9 = inlined_call_operand.hbm [shape: f32[2,16,16,16], index: 9, kind: output, shape index: {}]  }
   0x1   :  { %3895 = sst [smem:[#allocation26_spill]] %s3867_s0 }
   0x2   :  { %3896 = sst [smem:[#allocation27_spill]] %s3868_s1 }
   0x3   :  { %3897 = sst [smem:[#allocation28_spill]] %s3870_s3 }
   0x4   :  { %3898 = sst [smem:[#allocation29_spill]] %s3871_s4 }
   0x5   :  { %3899 = sst [smem:[#allocation30_spill]] %s3872_s5 }
   0x6   :  { %3900 = sst [smem:[#allocation31_spill]] %s3873_s6 }
   0x7   :  { %3901 = sst [smem:[#allocation32_spill]] %s3874_s7 }
   0x8   :  { %3902 = sst [smem:[#allocation33_spill]] %s3875_s8 }
   0x9   :  { %3903 = sst [smem:[#allocation34_spill]] %s3876_s9 }
   0xa   :  { %14 = vsyncpa [#allocation3], 0 }
   0xb   :  { %16 = vsyncpa [#allocation3 + $0x1], 0 }
   0xc   :  { %17 = vsyncpa [#allocation6], 0 }
   0xd   :  { %19 = vsyncpa [#allocation6 + $0x1], 0 }
   0xe   :  { %20 = vsyncpa [#allocation4], 0 }
   0xf   :  { %22 = vsyncpa [#allocation4 + $0x1], 0  ;;  %s2884_s30 = smov 0   ;;  %s2886_s10 = smov 0  }
  0x10   :  { %s2888_s11 = smov 0   ;;  %s2890_s12 = smov 0  }
  0x11   :  { %s2892_s13 = smov 0   ;;  %s2894_s14 = smov 0  }
  0x12   :  { %s2896_s15 = smov 0   ;;  %s2898_s16 = smov 0  }
  0x13   :  { %s2900_s17 = smov 0   ;;  %s2902_s18 = smov 0  }
  0x14   :  { %s2904_s19 = smov 0   ;;  %s2906_s20 = smov 0  }
  0x15   :  { %s2908_s21 = smov 0   ;;  %s2910_s22 = smov 0  }
  0x16 LB: > { %3904 = sst [smem:[#allocation13_spill]] %s2789_s14  ;;  %s2955_s23 = sadd.s32 4294967295, %s2821_s22   ;;  %s2821_s22 = sphi %s2910_s22, %s28_s22   ;;  %s2817_s21 = sphi %s2908_s21, %s3962_s21   ;;  %s2813_s20 = sphi %s2906_s20, %s3961_s20   ;;  %s2809_s19 = sphi %s2904_s19, %s3960_s19   ;;  %s2805_s18 = sphi %s2902_s18, %s3959_s18   ;;  %s2801_s17 = sphi %s2900_s17, %s3970_s17   ;;  %s2797_s16 = sphi %s2898_s16, %s3969_s16   ;;  %s2793_s15 = sphi %s2896_s15, %s3968_s15   ;;  %s2789_s14 = sphi %s2894_s14, %s3956_s14   ;;  %s2785_s13 = sphi %s2892_s13, %s3967_s13   ;;  %s2781_s12 = sphi %s2890_s12, %s3966_s12   ;;  %s2777_s11 = sphi %s2888_s11, %s3965_s11   ;;  %s2773_s10 = sphi %s2886_s10, %s3964_s10   ;;  %s2769_s30 = sphi %s2884_s30, %s3963_s30  }
  0x17   : > { %3905 = sst [smem:[#allocation14_spill]] %s2793_s15  ;;  %s37_s24 = sadd.s32 1, %s2813_s20 }
  0x18   : > { %3906 = sst [smem:[#allocation15_spill]] %s2801_s17  ;;  %p38_p0 = scmp.ge.s32.totalorder %s37_s24, 2 }
  0x19   : > { %3907 = sst [smem:[#allocation16_spill]] %s2805_s18  ;;  %s40_s25 = sadd.s32 1, %s2817_s21 }
  0x1a   : > { %3908 = sst [smem:[#allocation17_spill]] %s2809_s19  ;;  %p57_p1 = scmp.eq.s32.totalorder %s2821_s22, 0 }
  0x1b   : > { %3909 = sst [smem:[#allocation18_spill]] %s2813_s20  ;;  %p63_p2 = scmp.eq.s32.totalorder %s2955_s23, 0 }
  0x1c   : > { %3910 = sst [smem:[#allocation19_spill]] %s2817_s21  ;;  %s3972_s24 = smov (%p38_p0, %s37_s24), 0 }
  0x1d   : > { %3911 = sst [smem:[#allocation20_spill]] %s3972_s24  ;;  %s3974_s25 = smov (!%p38_p0, %s40_s25), %s2817_s21 }
  0x1e   : > { %s45_s26 = ssub.s32 %s2813_s20, %s3972_s24  ;;  %s2327_s27 = sshll.u32 %s2813_s20, 3 }
  0x1f   : > { %p42_p3 = scmp.ge.s32.totalorder %s3974_s25, 2  ;;  %s2328_s28 = sadd.s32 4294967295, %s2327_s27 }
  0x20   : > { %p74_p4 = scmp.gt.s32.totalorder %s2328_s28, 0  ;;  %s2329_s29 = sshll.u32 %s3972_s24, 3 }
  0x21   : > { %s3976_s25 = smov (%p42_p3, %s3974_s25), 0  ;;  %s2330_s19 = sadd.s32 4294967295, %s2329_s29 }
  0x22   : > { %3912 = sst [smem:[#allocation21_spill]] %s3976_s25  ;;  %s3978_s28 = smov (!%p74_p4, %s2328_s28), 0 }
  0x23   : > { %s2972_s9 = ssub.s32 %s2817_s21, %s3976_s25  ;;  %p78_p5 = scmp.gt.s32.totalorder %s2330_s19, 0 }
  0x24   : > { %s2975_s8 = sor.u32 %s45_s26, %s2972_s9  ;;  %s85_s6 = sadd.s32 1, %s2789_s14 }
  0x25   : > { %p47_p6 = scmp.eq.s32.totalorder %s2975_s8, 0  ;;  %s3980_s19 = smov (!%p78_p5, %s2330_s19), 0 }
  0x26   : > { %p92_p7 = scmp.ne.s32.totalorder %s2789_s14, %s2785_s13  ;;  %p98_p8 = scmp.ne.s32.totalorder %s2785_s13, %s2781_s12 }
  0x27   : > { %s81_s24 = ssub.s32 %s3978_s28, %s3980_s19  ;;  %s2983_s25 = sadd.s32 8, %s2327_s27 }
  0x28   : > { %s82_s7 = sor.u32 %s81_s24, %s2972_s9  ;;  %p2988_p9 = por %p92_p7, %p57_p1 }
  0x29   : > { %p83_p10 = scmp.eq.s32.totalorder %s82_s7, 0  ;;  %p2994_p11 = por %p98_p8, %p63_p2 }
  0x2a   : > { %s2999_s12 = sadd.s32 8, %s2329_s29  ;;  %p3893_p0 = scmp.lt.s32.totalorder %s2821_s22, 4 }
  0x2b   : > { %s3914_s5 = scalar_select %p2994_p11, 1, 0 }
  0x2c   : > { %s3002_s19 = scalar_select %p83_p10, %s2789_s14, %s85_s6  }
  0x2d   : > { %3915 = sst [smem:[#allocation22_spill]] %s3914_s5  ;;  %s3007_s24 = sshll.u32 %s2817_s21, 5 }
  0x2e   : > { %3916 = sst [smem:[#allocation23_spill]] %s3002_s19  ;;  %s355_s7 = sand.u32 1, %s2821_s22  }
  0x2f   : > { %s357_s27 = sand.u32 1, %s2789_s14   ;;  %s2343_s18 = sshll.u32 %s3978_s28, 1 }
  0x30   : > { %s2340_s4 = sshll.u32 %s357_s27, 4  ;;  %s368_s3 = sadd.s32 %s2343_s18, %s3007_s24 }
  0x31   : > { %s359_s5 = scalar_lea.vmem [#allocation5], %s2340_s4  ;;  %s2345_s6 = sshll.u32 %s368_s3, 3 }
  0x32   : > { %s373_s29 = sshll.u32 %s359_s5, 4  ;;  %s3917_s1 = sld [smem:[#allocation27_spill]]  ;;  %s374_s29 = int_to_ptr.vmem [resolvable:$true] %s373_s29 }
  0x33   : > { %p2423_p3 = pnand %p3893_p0, %p2988_p9  ;;  %p2351_p4 = scmp.ge.s32.totalorder %s2821_s22, 1 }
  0x34   : > { %s3020_s4 = scalar_lea.sflag [#allocation6], %s355_s7  ;;  %s3886_s3 = smov 128  }
  0x35   : > { %s3888_s5 = smov 8   ;;  %p409_p5 = scmp.lt.s32.totalorder %s2821_s22, 5 }
  0x36   : > { %s49_s28 = sadd.s32 1, %s2801_s17  ;;  %p56_p8 = scmp.ne.s32.totalorder %s2801_s17, %s2797_s16 }
  0x37   : > { %p3027_p7 = pnand %p2351_p4, %p409_p5  ;;  %p62_p9 = scmp.ne.s32.totalorder %s2797_s16, %s2793_s15 }
  0x38   : > { %s370_s14 = scalar_lea.hbm %s3917_s1, %s2345_s6  ;;  %p286_p10 = scmp.eq.s32.totalorder %s2955_s23, 3 }
  0x39   : > { %s371_s18 = sshll.u32 %s370_s14, 4  ;;  %s2326_s14 = sadd.s32 4294967294, %s2821_s22   ;;  %s372_s18 = int_to_ptr.hbm [resolvable:$true] %s371_s18 }
  0x3a   : > { %2425 = dma.hbm_to_vmem [thread:$0]  (!%p2423_p3), %s372_s18, 256, %s374_s29, %s3020_s4, %s3886_s3, %s3886_s3, %s3888_s5  }
  0x3b   : > { %s3036_s26 = scalar_select %p47_p6, %s2801_s17, %s49_s28  }
  0x3c   : > { %p292_p13 = scmp.eq.s32.totalorder %s2326_s14, 3  ;;  %p3045_p12 = por %p57_p1, %p56_p8 }
  0x3d   : > { %3919 = sst [smem:[#allocation24_spill]] %s3036_s26  ;;  %p3051_p3 = por %p63_p2, %p62_p9 }
  0x3e   : > { %p3055_p4 = por %p286_p10, %p56_p8  ;;  %p3059_p6 = por %p292_p13, %p62_p9 }
  0x3f   : > { %s330_s29 = sand.u32 1, %s2801_s17   ;;  %s2401_s6 = sshll.u32 %s2813_s20, 4 }
  0x40   : > { %s3923_s27 = scalar_select %p3059_p6, 1, 0 }
  0x41   : > { %s2335_s18 = sshll.u32 %s330_s29, 7  ;;  %s340_s14 = sadd.s32 %s2401_s6, %s3007_s24 }
  0x42   : > { %3924 = sst [smem:[#allocation25_spill]] %s3923_s27  ;;  %s2339_s28 = sshll.u32 %s340_s14, 3 }
  0x43   : > { %s334_s3 = scalar_lea.vmem [#allocation2], %s2335_s18  ;;  %s3925_s0 = sld [smem:[#allocation26_spill]] }
  0x44   : > { %s345_s5 = sshll.u32 %s334_s3, 4  ;;  %p2420_p13 = pnand %p3893_p0, %p3045_p12  ;;  %s346_s5 = int_to_ptr.vmem [resolvable:$true] %s345_s5 }
  0x45   : > { %s331_s6 = scalar_lea.sflag [#allocation3], %s330_s29  ;;  %s3926_s20 = smov 8  }
  0x46   : > { %s3927_s14 = smov 128   ;;  %p3928_p5 = scmp.lt.s32.totalorder %s2983_s25, 15 }
  0x47   : > { %p3929_p8 = scmp.lt.s32.totalorder %s2999_s12, 15  ;;  %s121_s1 = sadd.s32 1, %s2777_s11 }
  0x48   : > { %s3982_s25 = smov (!%p3928_p5, %s2983_s25), 15  ;;  %p128_p9 = scmp.ne.s32.totalorder %s2777_s11, %s2773_s10 }
  0x49   : > { %s342_s27 = scalar_lea.hbm %s3925_s0, %s2339_s28  ;;  %s3984_s12 = smov (!%p3929_p8, %s2999_s12), 15 }
  0x4a   : > { %s343_s17 = sshll.u32 %s342_s27, 4  ;;  %s117_s3 = ssub.s32 %s3982_s25, %s3984_s12  ;;  %s344_s17 = int_to_ptr.hbm [resolvable:$true] %s343_s17 }
  0x4b   : > { %2422 = dma.hbm_to_vmem [thread:$0]  (!%p2420_p13), %s344_s17, 2048, %s346_s5, %s331_s6, %s3927_s14, %s3927_s14, %s3926_s20  }
  0x4c   : > { %p134_p10 = scmp.ne.s32.totalorder %s2773_s10, %s2769_s30  ;;  %s118_s26 = sor.u32 %s117_s3, %s2972_s9 }
  0x4d   : > { %p3090_p12 = por %p128_p9, %p57_p1  ;;  %p119_p0 = scmp.eq.s32.totalorder %s118_s26, 0 }
  0x4e   : > { %p3096_p13 = por %p134_p10, %p63_p2  ;;  %s385_s5 = sand.u32 1, %s2777_s11  }
  0x4f   : > { %s2348_s27 = sshll.u32 %s3982_s25, 1  ;;  %s2346_s30 = sshll.u32 %s385_s5, 4 }
  0x50   : > { %s3102_s29 = scalar_select %p119_p0, %s2777_s11, %s121_s1  }
  0x51   : > { %s396_s9 = sadd.s32 %s2348_s27, %s3007_s24  ;;  %s387_s3 = scalar_lea.vmem [#allocation7], %s2346_s30 }
  0x52   : > { %s2350_s12 = sshll.u32 %s396_s9, 3  ;;  %s401_s0 = sshll.u32 %s387_s3, 4  ;;  %s402_s0 = int_to_ptr.vmem [resolvable:$true] %s401_s0 }
  0x53   : > { %s398_s6 = scalar_lea.hbm %s3869_s2, %s2350_s12  ;;  %p3932_p1 = scmp.lt.s32.totalorder %s2821_s22, 4 }
  0x54   : > { %s399_s15 = sshll.u32 %s398_s6, 4  ;;  %413 = sbr.rel (%p3027_p7) target bundleno = 828 (0x33c), region = 56  ;;  %s400_s15 = int_to_ptr.hbm [resolvable:$true] %s399_s15 }
  0x55   : > { %p2426_p2 = pnand %p3932_p1, %p3090_p12  ;;  %s3119_s25 = sand.u32 (!%p3027_p7), 1, %s2797_s16  }
  0x56   : > { %s2352_s24 = sshll.u32 (!%p3027_p7), %s3119_s25, 7  ;;  %s416_s1 = scalar_lea.sflag (!%p3027_p7), [#allocation3], %s3119_s25 }
  0x57   : > { %2428 = dma.hbm_to_vmem [thread:$0]  (!%p2426_p2), %s400_s15, 256, %s402_s0, %s3020_s4, %s3927_s14, %s3927_s14, %s3926_s20  }
  0x58   : > { %s3125_s26 = scalar_lea.vmem (!%p3027_p7), [#allocation2], %s2352_s24 }
  0x59   : > { %2752 = dma.done.wait (%p3051_p3), %s416_s1, 2048  }
  0x5a   : > { %2754 = vsyncadd (%p3051_p3), %s416_s1, 4294965248  ;;  %s425_s15 = sand.u32 1, %s2955_s23   ;;  %s427_s20 = sand.u32 1, %s2785_s13  }
  0x5b   : > { %s2353_s4 = sshll.u32 %s427_s20, 4  ;;  %s426_s21 = scalar_lea.sflag [#allocation6], %s425_s15 }
  0x5c   : > { %s429_s14 = scalar_lea.vmem [#allocation5], %s2353_s4 }
  0x5d   : > { %2756 = dma.done.wait (%p2994_p11), %s426_s21, 256  }
  0x5e   : > { %2758 = vsyncadd (%p2994_p11), %s426_s21, 4294967040  ;;  %s437_s19 = sand.u32 1, %s2773_s10  }
  0x5f   : > { %s3138_s5 = sshll.u32 %s437_s19, 4 }
  0x60   : > { %s439_s7 = scalar_lea.vmem [#allocation7], %s3138_s5 }
  0x61   : > { %2760 = dma.done.wait (%p3096_p13), %s426_s21, 256  }
  0x62   : > { %2762 = vsyncadd (%p3096_p13), %s426_s21, 4294967040  ;;  %s3934_s30 = sld [smem:[#allocation28_spill]]  ;;  %v496_v1 = vld [vmem:[%s429_s14] sm:$0xff]  ;;  %v497_v2 = vld [vmem:[%s429_s14 + $0x8] sm:$0xff]  ;;  %vm598_vm0 = vcmask 130048   ;;  %vm1157_vm2 = vcmask 1040384  }
  0x63   : > { %v498_v3 = vpack.c.bf16 %v496_v1, %v496_v1  ;;  %v499_v4 = vpack.c.bf16 %v497_v2, %v497_v2  ;;  %v512_v5 = vld [vmem:[%s3125_s26 + $0x60] sm:$0xff]  ;;  %v513_v6 = vld [vmem:[%s3125_s26 + $0x68] sm:$0xff]  ;;  %v514_v17 = vld [vmem:[%s3125_s26 + $0x70] sm:$0xff]  ;;  %s3935_s17 = sld [smem:[#allocation16_spill]]  ;;  %vm1218_vm4 = vcmask 1046528   ;;  %s2825_s6 = smov 4  }
  0x64   : > { %v528_v7 = vpack.c.bf16 %v512_v5, %v512_v5  ;;  %v529_v8 = vpack.c.bf16 %v513_v6, %v513_v6  ;;  %v500_v15 = vld [vmem:[%s3125_s26] sm:$0xff]  ;;  %v501_v16 = vld [vmem:[%s3125_s26 + $0x8] sm:$0xff]  ;;  %v515_v18 = vld [vmem:[%s3125_s26 + $0x78] sm:$0xff]  ;;  %v530_v21 = vpack.c.bf16 %v514_v17, %v514_v17  ;;  %s3936_s28 = sld [smem:[#allocation29_spill]]  ;;  %s2826_s3 = smov 28  }
  0x65   : > { %v538_v9 = vunpack.c.l.b16 %v498_v3  ;;  %v539_v10 = vunpack.c.l.b16 %v499_v4  ;;  %v516_v19 = vpack.c.bf16 %v500_v15, %v500_v15  ;;  %v517_v20 = vpack.c.bf16 %v501_v16, %v501_v16  ;;  %v502_v29 = vld [vmem:[%s3125_s26 + $0x10] sm:$0xff]  ;;  %v503_v30 = vld [vmem:[%s3125_s26 + $0x18] sm:$0xff]  ;;  %v504_v43 = vld [vmem:[%s3125_s26 + $0x20] sm:$0xff]  ;;  %s2827_s0 = smov 16   ;;  %s2828_s15 = smov 8  }
  0x66   : > { %v569_v11 = vunpack.c.l.b16 %v528_v7  ;;  %v570_v12 = vunpack.c.l.b16 %v529_v8  ;;  %v531_v22 = vpack.c.bf16 %v515_v18, %v515_v18  ;;  %v571_v25 = vunpack.c.l.b16 %v530_v21  ;;  %v532_v31 = vld [vmem:[%s439_s7] sm:$0xff]  ;;  %v533_v32 = vld [vmem:[%s439_s7 + $0x8] sm:$0xff]  ;;  %s2829_s20 = smov 32   ;;  %s2830_s4 = smov 12  }
  0x67   : > { %v540_v13 = vpack.c.b16 %v539_v10, %v538_v9  ;;  %v557_v23 = vunpack.c.l.b16 %v516_v19  ;;  %v558_v24 = vunpack.c.l.b16 %v517_v20  ;;  %v518_v33 = vpack.c.bf16 %v502_v29, %v502_v29  ;;  %v505_v44 = vld [vmem:[%s3125_s26 + $0x28] sm:$0xff]  ;;  %v506_v50 = vld [vmem:[%s3125_s26 + $0x30] sm:$0xff]  ;;  %v507_v51 = vld [vmem:[%s3125_s26 + $0x38] sm:$0xff]  ;;  %s2831_s21 = smov 20   ;;  %s2832_s14 = smov 24  }
  0x68   : > { %v2402_v0 = vld [vmem:[%s3934_s30] sm:$0xff]  ;;  %v579_v14 = vpack.c.b16 %v570_v12, %v569_v11  ;;  %v572_v26 = vunpack.c.l.b16 %v531_v22  ;;  %v519_v34 = vpack.c.bf16 %v503_v30, %v503_v30  ;;  %v534_v35 = vpack.c.bf16 %v532_v31, %v532_v31  ;;  %v509_v58 = vld [vmem:[%s3125_s26 + $0x48] sm:$0xff]  ;;  %v511_v1 = vld [vmem:[%s3125_s26 + $0x58] sm:$0xff]  ;;  %s3945_s7 = sld [smem:[#allocation30_spill]] }
  0x69   : > { %636 = vmatpush.bf16.msra.mxu0 %v2402_v0  ;;  %2406 = vmatpush.bf16.msra.mxu3 %v2402_v0  ;;  %v573_v27 = vpack.c.b16 %v558_v24, %v557_v23  ;;  %v535_v36 = vpack.c.bf16 %v533_v32, %v533_v32  ;;  %v559_v37 = vunpack.c.l.b16 %v518_v33  ;;  %v520_v45 = vpack.c.bf16 %v504_v43, %v504_v43  ;;  %v508_v57 = vld [vmem:[%s3125_s26 + $0x40] sm:$0xff]  ;;  %v510_v0 = vld [vmem:[%s3125_s26 + $0x50] sm:$0xff]  ;;  %p749_p11 = scmp.gt.s32.totalorder %s3935_s17, 0  ;;  %p793_p0 = scmp.lt.s32.totalorder %s3935_s17, 1 }
  0x6a   : > { %v580_v28 = vpack.c.b16 %v572_v26, %v571_v25  ;;  %v560_v38 = vunpack.c.l.b16 %v519_v34  ;;  %v583_v39 = vunpack.c.l.b16 %v534_v35  ;;  %v521_v46 = vpack.c.bf16 %v505_v44, %v505_v44  ;;  %v3182_v7 = vld [vmem:[%s3936_s28] ss:$0 sm:$0xff]  ;;  %s3946_s28 = sld [smem:[#allocation32_spill]] }
  0x6b   : > { %v584_v40 = vunpack.c.l.b16 %v535_v36  ;;  %v561_v47 = vunpack.c.l.b16 %v520_v45  ;;  %v522_v52 = vpack.c.bf16 %v506_v50, %v506_v50  ;;  %v523_v53 = vpack.c.bf16 %v507_v51, %v507_v51  ;;  %s750_s9 = scalar_select %p749_p11, 1, 0 }
  0x6c   : > { %2360 = vmatmul.msk.bf16.vlgmr.msra.gmra.mxu0 %vm598_vm0, %v540_v13  ;;  %2367 = vmatmul.msk.bf16.vlgmr.msra.gmra.mxu3 %vm598_vm0, %v579_v14  ;;  %v574_v41 = vpack.c.b16 %v560_v38, %v559_v37  ;;  %v562_v48 = vunpack.c.l.b16 %v521_v46  ;;  %v524_v59 = vpack.c.bf16 %v508_v57, %v508_v57  ;;  %v525_v60 = vpack.c.bf16 %v509_v58, %v509_v58  ;;  %s3267_s1 = scalar_select %p793_p0, 1, 0 }
  0x6d   : > { %v585_v42 = vpack.c.b16 %v584_v40, %v583_v39  ;;  %v563_v54 = vunpack.c.l.b16 %v522_v52  ;;  %v564_v55 = vunpack.c.l.b16 %v523_v53  ;;  %v526_v2 = vpack.c.bf16 %v510_v0, %v510_v0  ;;  %s3950_s30 = sld [smem:[#allocation34_spill]] }
  0x6e   : > { %v575_v49 = vpack.c.b16 %v562_v48, %v561_v47  ;;  %v565_v61 = vunpack.c.l.b16 %v524_v59  ;;  %v566_v62 = vunpack.c.l.b16 %v525_v60  ;;  %v527_v3 = vpack.c.bf16 %v511_v1, %v511_v1 }
  0x6f   : > { %v576_v56 = vpack.c.b16 %v564_v55, %v563_v54  ;;  %v567_v4 = vunpack.c.l.b16 %v526_v2  ;;  %v708_v8 = vlaneseq  ;;  %v751_v9 = vstv %s750_s9 }
  0x70   : > { %v577_v63 = vpack.c.b16 %v566_v62, %v565_v61  ;;  %v568_v5 = vunpack.c.l.b16 %v527_v3  ;;  %vm752_vm1 = vcmp.eq.s32.totalorder %v751_v9, 1 }
  0x71   : > { %v3185_v12 = vshrl.u32 %v708_v8, 7 }
  0x72   : > { %v578_v6 = vpack.c.b16 %v568_v5, %v567_v4 }
  0x73   : > { %v901_v15 = vand.u32 15, %v3185_v12  ;;  %v710_v26 = vadd.s32 8, %v3185_v12  ;;  %v724_v44 = vadd.s32 120, %v3185_v12  ;;  %v711_v52 = vadd.s32 16, %v3185_v12  ;;  %s3951_s9 = smov %s3950_s30 }
  0x74   : > { %v725_v3 = vadd.s32 128, %v3185_v12  ;;  %v712_v8 = vadd.s32 24, %v3185_v12 }
  0x75   : > { %vm1279_vm3 = vcmp.ne.s32.totalorder %v901_v15, 0  ;;  %v908_v38 = vand.u32 15, %v710_v26  ;;  %v1006_v60 = vand.u32 15, %v724_v44  ;;  %v915_v4 = vand.u32 15, %v711_v52 }
  0x76   : > { %v795_v52 = vstv %s3267_s1  ;;  %s3947_s1 = sld [smem:[#allocation31_spill]] }
  0x77   : > { %vm1360_vm5 = vcmp.ne.s32.totalorder %v908_v38, 15  ;;  %vm1374_vm6 = vcmp.ne.s32.totalorder %v1006_v60, 15  ;;  %vm3257_vm7 = vcmp.ne.s32.totalorder %v915_v4, 0  ;;  %vm3309_vm10 = vcmp.eq.s32.totalorder %v795_v52, 1 }
  0x7c   : > { %2361 = vmatmul.msk.bf16.gmra.mxu0 %vm598_vm0, %v573_v27  ;;  %2368 = vmatmul.msk.bf16.gmra.mxu3 %vm598_vm0, %v580_v28 }
  0x8c   : > { %2362 = vmatmul.msk.bf16.gmra.mxu0 %vm598_vm0, %v574_v41  ;;  %2369 = vmatmul.msk.bf16.gmra.mxu3 %vm598_vm0, %v585_v42 }
  0x9c   : > { %2363 = vmatmul.msk.bf16.gmra.mxu0 %vm598_vm0, %v575_v49 }
  0xac   : > { %2364 = vmatmul.msk.bf16.gmra.mxu0 %vm598_vm0, %v576_v56 }
  0xbc   : > { %2365 = vmatmul.msk.bf16.gmra.mxu0 %vm598_vm0, %v577_v63 }
  0xcc   : > { %2366 = vmatmul.msk.bf16.gmra.mxu0 %vm598_vm0, %v578_v6 }
  0xe9   : > { %v638_v10 = vpop.f32.mrf.mxu0 }
  0xea   : > { %v639_v11 = vadd.f32 %v3182_v7, %v638_v10 }
  0xec   : > { %v688_v13 = vmax.f32 %v639_v11, 0.0 }
  0xee   : > { %v877_v14 = vsel %vm752_vm1, %v688_v13, 0.0 }
  0xef   : > { %v1158_v16 = vrot.slane %v877_v14, 7  ;;  %v673_v17 = vpop.f32.mrf.mxu3  ;;  %v1459_v24 = vpack.c.bf16 %v877_v14, %v877_v14  ;;  %v1219_v54 = vrot.slane %v877_v14, 1 }
  0xf0   : > { %v674_v21 = vadd.f32 %v3182_v7, %v673_v17 }
  0xf1   : > { %v640_v18 = vpop.f32.mrf.mxu0  ;;  %v1217_v19 = vsel %vm1157_vm2, 0.0, %v1158_v16  ;;  %v1555_v34 = vunpack.c.l.b16 %v1459_v24 }
  0xf2   : > { %v641_v20 = vadd.f32 %v3182_v7, %v640_v18  ;;  %v1339_v23 = vsel %vm1279_vm3, %v1217_v19, 0.0  ;;  %v3194_v27 = vmax.f32 %v674_v21, 0.0  ;;  %v922_v21 = vand.u32 15, %v712_v8 }
  0xf3   : > { %v1439_v30 = vpack.c.bf16 %v1339_v23, %v1339_v23 }
  0xf4   : > { %v689_v22 = vmax.f32 %v641_v20, 0.0  ;;  %v1473_v40 = vpack.c.bf16 %v3194_v27, %v3194_v27  ;;  %v1185_v47 = vrot.slane %v3194_v27, 7  ;;  %v1246_v18 = vrot.slane %v3194_v27, 1 }
  0xf5   : > { %v3211_v45 = vunpack.c.l.b16 %v1439_v30  ;;  %vm3283_vm9 = vcmp.ne.s32.totalorder %v922_v21, 15 }
  0xf6   : > { %v3191_v25 = vsel %vm752_vm1, %v689_v22, 0.0  ;;  %v1569_v55 = vunpack.c.l.b16 %v1473_v40 }
  0xf7   : > { %v1159_v28 = vrot.slane %v3191_v25, 7  ;;  %v1460_v29 = vpack.c.bf16 %v3191_v25, %v3191_v25  ;;  %v675_v31 = vpop.f32.mrf.mxu3  ;;  %v1220_v48 = vrot.slane %v3191_v25, 1 }
  0xf8   : > { %v676_v32 = vadd.f32 %v3182_v7, %v675_v31 }
  0xf9   : > { %v643_v33 = vpop.f32.mrf.mxu0  ;;  %v1556_v35 = vunpack.c.l.b16 %v1460_v29  ;;  %v1160_v36 = vsel %vm1157_vm2, %v1158_v16, %v1159_v28  ;;  %v1221_v0 = vsel %vm1218_vm4, %v1219_v54, %v1220_v48  ;;  %v1013_v16 = vand.u32 15, %v725_v3 }
  0xfa   : > { %v644_v37 = vadd.f32 %v3182_v7, %v643_v33  ;;  %v1440_v39 = vpack.c.bf16 %v1160_v36, %v1160_v36  ;;  %v3206_v41 = vmax.f32 %v676_v32, 0.0  ;;  %v1479_v11 = vpack.c.bf16 %v1221_v0, %v1221_v0 }
  0xfb   : > { %v1571_v42 = vpack.c.b16 %v1556_v35, %v1555_v34  ;;  %vm3279_vm8 = vcmp.ne.s32.totalorder %v1013_v16, 0 }
  0xfc   : > { %v3208_v43 = vmax.f32 %v644_v37, 0.0  ;;  %v3213_v46 = vunpack.c.l.b16 %v1440_v39  ;;  %v1187_v49 = vrot.slane %v3206_v41, 7  ;;  %v1474_v50 = vpack.c.bf16 %v3206_v41, %v3206_v41 }
  0xfd   : > { %1579 = vrot.lane.b32.xlu0 %v1571_v42, %s2825_s6  ;;  %v1248_v13 = vrot.slane %v3206_v41, 1  ;;  %v1611_v26 = vunpack.c.l.b16 %v1479_v11 }
  0xfe   : > { %v1222_v51 = vrot.slane %v3208_v43, 1  ;;  %v1531_v53 = vpack.c.b16 %v3213_v46, %v3211_v45  ;;  %v1570_v56 = vunpack.c.l.b16 %v1474_v50  ;;  %v3230_v57 = vsel %vm1157_vm2, %v1185_v47, %v1187_v49 }
  0xff   : > { %v678_v58 = vpop.f32.mrf.mxu3  ;;  %v1461_v10 = vpack.c.bf16 %v3208_v43, %v3208_v43  ;;  %v1161_v30 = vrot.slane %v3208_v43, 7  ;;  %v1249_v34 = vsel %vm1218_vm4, %v1246_v18, %v1248_v13 }
 0x100   : > { %v1223_v59 = vsel %vm1218_vm4, %v1220_v48, %v1222_v51  ;;  %v679_v61 = vadd.f32 %v3182_v7, %v678_v58  ;;  %v3236_v63 = vpack.c.b16 %v1570_v56, %v1569_v55  ;;  %v1493_v54 = vpack.c.bf16 %v1249_v34, %v1249_v34 }
 0x101   : > { %v645_v62 = vpop.f32.mrf.mxu0  ;;  %v1420_v1 = vsel %vm1360_vm5, %v1223_v59, 0.0  ;;  %v1557_v23 = vunpack.c.l.b16 %v1461_v10  ;;  %v1162_v59 = vsel %vm1157_vm2, %v1159_v28, %v1161_v30 }
 0x102   : > { %v646_v2 = vadd.f32 %v3182_v7, %v645_v62  ;;  %v3241_v5 = vmax.f32 %v679_v61, 0.0  ;;  %1750 = vrot.lane.b32.xlu1 %v3236_v63, %s2826_s3  ;;  %v1480_v6 = vpack.c.bf16 %v1420_v1, %v1420_v1  ;;  %v1625_v3 = vunpack.c.l.b16 %v1493_v54 }
 0x103   : > { %v1341_v41 = vsel %vm3257_vm7, %v1162_v59, 0.0 }
 0x104   : > { %v3246_v9 = vmax.f32 %v646_v2, 0.0  ;;  %v1250_v14 = vrot.slane %v3241_v5, 1  ;;  %v1612_v19 = vunpack.c.l.b16 %v1480_v6  ;;  %v1189_v31 = vrot.slane %v3241_v5, 7 }
 0x105   : > { %1593 = vrot.lane.b32.xlu0 %v3236_v63, %s2825_s6  ;;  %v1475_v48 = vpack.c.bf16 %v3241_v5, %v3241_v5 }
 0x106   : > { %v1462_v15 = vpack.c.bf16 %v3246_v9, %v3246_v9  ;;  %v1251_v20 = vsel %vm1218_vm4, %v1248_v13, %v1250_v14  ;;  %v1163_v35 = vrot.slane %v3246_v9, 7  ;;  %v1627_v40 = vpack.c.b16 %v1612_v19, %v1611_v26 }
 0x107   : > { %v680_v22 = vpop.f32.mrf.mxu3  ;;  %v1434_v29 = vsel %vm1374_vm6, %v1251_v20, 0.0  ;;  %v1224_v55 = vrot.slane %v3246_v9, 1  ;;  %v1190_v62 = vsel %vm1157_vm2, %v1187_v49, %v1189_v31  ;;  %v1674_v4 = vunpack.c.l.b16 %v1475_v48 }
 0x108   : > { %v1558_v24 = vunpack.c.l.b16 %v1462_v15  ;;  %v681_v32 = vadd.f32 %v3182_v7, %v680_v22  ;;  %v1494_v38 = vpack.c.bf16 %v1434_v29, %v1434_v29  ;;  %v1164_v0 = vsel %vm1157_vm2, %v1161_v30, %v1163_v35 }
 0x109   : > { %v648_v33 = vpop.f32.mrf.mxu0  ;;  %v1355_v10 = vsel %vm3279_vm8, %v1190_v62, 0.0  ;;  %v1442_v11 = vpack.c.bf16 %v1164_v0, %v1164_v0  ;;  %v1225_v19 = vsel %vm1218_vm4, %v1222_v51, %v1224_v55  ;;  %v1441_v22 = vpack.c.bf16 %v1341_v41, %v1341_v41 }
 0x10a   : > { %v649_v36 = vadd.f32 %v3182_v7, %v648_v33  ;;  %v1572_v37 = vpack.c.b16 %v1558_v24, %v1557_v23  ;;  %v3277_v39 = vmax.f32 %v681_v32, 0.0  ;;  %v1626_v61 = vunpack.c.l.b16 %v1494_v38 }
 0x10b   : > { %v1455_v24 = vpack.c.bf16 %v1355_v10, %v1355_v10  ;;  %v726_v26 = vadd.s32 136, %v3185_v12  ;;  %v1518_v51 = vunpack.c.l.b16 %v1442_v11  ;;  %v1481_v29 = vpack.c.bf16 %v1225_v19, %v1225_v19 }
 0x10c   : > { %v3289_v50 = vmax.f32 %v649_v36, 0.0  ;;  %1581 = vrot.lane.b32.xlu2 %v1572_v37, %s2825_s6  ;;  %1677 = vrot.lane.b32.xlu1 %v1572_v37, %s2827_s0  ;;  %v1191_v56 = vrot.slane %v3277_v39, 7  ;;  %v1476_v58 = vpack.c.bf16 %v3277_v39, %v3277_v39  ;;  %v3327_v16 = vpack.c.b16 %v1626_v61, %v1625_v3 }
 0x10d   : > { %1635 = vrot.lane.b32.xlu0 %v1627_v40, %s2828_s15  ;;  %v713_v30 = vadd.s32 32, %v3185_v12  ;;  %v1517_v34 = vunpack.c.l.b16 %v1441_v22  ;;  %v714_v37 = vadd.s32 40, %v3185_v12  ;;  %v1653_v40 = vunpack.c.l.b16 %v1455_v24 }
 0x10e   : > { %v1226_v60 = vrot.slane %v3289_v50, 1  ;;  %v1675_v2 = vunpack.c.l.b16 %v1476_v58  ;;  %v1192_v25 = vsel %vm1157_vm2, %v1189_v31, %v1191_v56  ;;  %v1252_v31 = vrot.slane %v3277_v39, 1  ;;  %v2404_v39 = vld [vmem:[%s3945_s7 + $0x8] sm:$0xff] }
 0x10f   : > { %v683_v28 = vpop.f32.mrf.mxu3  ;;  %v1456_v17 = vpack.c.bf16 %v1192_v25, %v1192_v25  ;;  %v1020_v42 = vand.u32 15, %v726_v26  ;;  %v1165_v44 = vrot.slane %v3289_v50, 7  ;;  %v3352_v52 = vpack.c.b16 %v1518_v51, %v1517_v34 }
 0x110   : > { %v1227_v49 = vsel %vm1218_vm4, %v1224_v55, %v1226_v60  ;;  %v684_v6 = vadd.f32 %v3182_v7, %v683_v28  ;;  %v3332_v21 = vpack.c.b16 %v1675_v2, %v1674_v4  ;;  %v1613_v54 = vunpack.c.l.b16 %v1481_v29 }
 0x111   : > { %v650_v8 = vpop.f32.mrf.mxu0  ;;  %v1422_v13 = vsel %vm3283_vm9, %v1227_v49, 0.0  ;;  %v1654_v33 = vunpack.c.l.b16 %v1456_v17  ;;  %v929_v55 = vand.u32 15, %v713_v30  ;;  %v1253_v62 = vsel %vm1218_vm4, %v1250_v14, %v1252_v31 }
 0x112   : > { %v651_v15 = vadd.f32 %v3182_v7, %v650_v8  ;;  %v706_v20 = vmax.f32 %v684_v6, 0.0  ;;  %v1482_v23 = vpack.c.bf16 %v1422_v13, %v1422_v13  ;;  %v936_v25 = vand.u32 15, %v714_v37 }
 0x113   : > { %v3357_v61 = vpack.c.b16 %v1654_v33, %v1653_v40  ;;  %v1463_v28 = vpack.c.bf16 %v3289_v50, %v3289_v50  ;;  %vm1376_vm11 = vcmp.ne.s32.totalorder %v1020_v42, 15  ;;  %vm1283_vm12 = vcmp.ne.s32.totalorder %v929_v55, 0 }
 0x114   : > { %1771 = vrot.lane.b32.xlu2 %v3327_v16, %s2829_s20  ;;  %1649 = vrot.lane.b32.xlu1 %v3327_v16, %s2828_s15  ;;  %v3341_v43 = vsel %vm3309_vm10, %v706_v20, 0.0  ;;  %v3347_v32 = vmax.f32 %v651_v15, 0.0  ;;  %v1614_v36 = vunpack.c.l.b16 %v1482_v23  ;;  %v1166_v41 = vsel %vm1157_vm2, %v1163_v35, %v1165_v44 }
 0x115   : > { %1691 = vrot.lane.b32.xlu0 %v3332_v21, %s2827_s0  ;;  %v1254_v38 = vrot.slane %v3341_v43, 1  ;;  %vm1364_vm13 = vcmp.ne.s32.totalorder %v936_v25, 15  ;;  %v1559_v10 = vunpack.c.l.b16 %v1463_v28  ;;  %v1343_v13 = vsel %vm1283_vm12, %v1166_v41, 0.0 }
 0x116   : > { %v1464_v58 = vpack.c.bf16 %v3347_v32, %v3347_v32  ;;  %v1167_v0 = vrot.slane %v3347_v32, 7  ;;  %v1628_v2 = vpack.c.b16 %v1614_v36, %v1613_v54  ;;  %v1228_v14 = vrot.slane %v3347_v32, 1 }
 0x117   : > { %v1255_v5 = vsel %vm1218_vm4, %v1252_v31, %v1254_v38  ;;  %v1495_v17 = vpack.c.bf16 %v1253_v62, %v1253_v62  ;;  %v1443_v26 = vpack.c.bf16 %v1343_v13, %v1343_v13  ;;  %vm1961_vm12 = vcmask 1041408  }
 0x118   : > { %v1560_v4 = vunpack.c.l.b16 %v1464_v58  ;;  %v1436_v49 = vsel %vm1376_vm11, %v1255_v5, 0.0  ;;  %v1168_v8 = vsel %vm1157_vm2, %v1165_v44, %v1167_v0  ;;  %v1229_v9 = vsel %vm1218_vm4, %v1226_v60, %v1228_v14 }
 0x119   : > { %v653_v48 = vpop.f32.mrf.mxu0  ;;  %v1496_v19 = vpack.c.bf16 %v1436_v49, %v1436_v49  ;;  %v1444_v22 = vpack.c.bf16 %v1168_v8, %v1168_v8  ;;  %v1483_v51 = vpack.c.bf16 %v1229_v9, %v1229_v9  ;;  %v1695_v29 = vunpack.c.l.b16 %v1495_v17 }
 0x11a   : > { %v654_v59 = vadd.f32 %v3182_v7, %v653_v48  ;;  %v1573_v20 = vpack.c.b16 %v1560_v4, %v1559_v10  ;;  %v715_v60 = vadd.s32 48, %v3185_v12  ;;  %v1519_v34 = vunpack.c.l.b16 %v1443_v26 }
 0x11b   : > { %v1696_v30 = vunpack.c.l.b16 %v1496_v19  ;;  %v1520_v31 = vunpack.c.l.b16 %v1444_v22  ;;  %v1615_v37 = vunpack.c.l.b16 %v1483_v51  ;;  %v717_v51 = vadd.s32 64, %v3185_v12 }
 0x11c   : > { %v3365_v3 = vmax.f32 %v654_v59, 0.0  ;;  %1670 = vrot.lane.b32.xlu2 %v3357_v61, %s2830_s4  ;;  %1656 = vrot.lane.b32.xlu1 %v3352_v52, %s2830_s4  ;;  %v943_v55 = vand.u32 15, %v715_v60  ;;  %vm1777_vm11 = vcmask 31744  }
 0x11d   : > { %1637 = vrot.lane.b32.xlu0 %v1628_v2, %s2828_s15  ;;  %v3394_v33 = vpack.c.b16 %v1696_v30, %v1695_v29  ;;  %v3397_v42 = vpack.c.b16 %v1520_v31, %v1519_v34 }
 0x11e   : > { %v1230_v6 = vrot.slane %v3365_v3, 1  ;;  %v1169_v44 = vrot.slane %v3365_v3, 7  ;;  %v1465_v59 = vpack.c.bf16 %v3365_v3, %v3365_v3  ;;  %vm1285_vm14 = vcmp.ne.s32.totalorder %v943_v55, 0 }
 0x120   : > { %v1231_v15 = vsel %vm1218_vm4, %v1228_v14, %v1230_v6  ;;  %v1170_v28 = vsel %vm1157_vm2, %v1167_v0, %v1169_v44  ;;  %v1561_v41 = vunpack.c.l.b16 %v1465_v59 }
 0x121   : > { %v655_v11 = vpop.f32.mrf.mxu0  ;;  %v1424_v35 = vsel %vm1364_vm13, %v1231_v15, 0.0  ;;  %v1345_v8 = vsel %vm1285_vm14, %v1170_v28, 0.0  ;;  %vm1802_vm14 = vcmask 64512  }
 0x122   : > { %v656_v23 = vadd.f32 %v3182_v7, %v655_v11  ;;  %v1484_v24 = vpack.c.bf16 %v1424_v35, %v1424_v35  ;;  %v1445_v0 = vpack.c.bf16 %v1345_v8, %v1345_v8 }
 0x124   : > { %1698 = vrot.lane.b32.xlu2 %v1628_v2, %s2831_s21  ;;  %1583 = vrot.lane.b32.xlu1 %v1573_v20, %s2825_s6  ;;  %v3391_v32 = vmax.f32 %v656_v23, 0.0  ;;  %v1616_v50 = vunpack.c.l.b16 %v1484_v24  ;;  %v716_v2 = vadd.s32 56, %v3185_v12  ;;  %v1521_v22 = vunpack.c.l.b16 %v1445_v0 }
 0x125   : > { %1740 = vrot.lane.b32.xlu0 %v1573_v20, %s2826_s3 }
 0x126   : > { %v1466_v48 = vpack.c.bf16 %v3391_v32, %v3391_v32  ;;  %v1629_v54 = vpack.c.b16 %v1616_v50, %v1615_v37  ;;  %v1171_v58 = vrot.slane %v3391_v32, 7  ;;  %v950_v49 = vand.u32 15, %v716_v2 }
 0x127   : > { %v1232_v10 = vrot.slane %v3391_v32, 1  ;;  %v957_v32 = vand.u32 15, %v717_v51 }
 0x128   : > { %v1562_v25 = vunpack.c.l.b16 %v1466_v48  ;;  %v1172_v5 = vsel %vm1157_vm2, %v1169_v44, %v1171_v58  ;;  %vm1366_vm15 = vcmp.ne.s32.totalorder %v950_v49, 15  ;;  %v718_v44 = vadd.s32 72, %v3185_v12 }
 0x129   : > { %v658_v36 = vpop.f32.mrf.mxu0  ;;  %v1446_v13 = vpack.c.bf16 %v1172_v5, %v1172_v5  ;;  %v1233_v9 = vsel %vm1218_vm4, %v1230_v6, %v1232_v10  ;;  %vm1287_vm1 = vcmp.ne.s32.totalorder %v957_v32, 0  ;;  %v1454_v32 = vpack.c.bf16 %v3230_v57, %v3230_v57 }
 0x12a   : > { %v659_v40 = vadd.f32 %v3182_v7, %v658_v36  ;;  %v1574_v11 = vpack.c.b16 %v1562_v25, %v1561_v41  ;;  %v1485_v26 = vpack.c.bf16 %v1233_v9, %v1233_v9  ;;  %v964_v25 = vand.u32 15, %v718_v44 }
 0x12b   : > { %v1522_v17 = vunpack.c.l.b16 %v1446_v13 }
 0x12c   : > { %1679 = vrot.lane.b32.xlu2 %v1573_v20, %s2827_s0  ;;  %1658 = vrot.lane.b32.xlu1 %v3397_v42, %s2830_s4  ;;  %v3408_v62 = vmax.f32 %v659_v40, 0.0  ;;  %v1617_v31 = vunpack.c.l.b16 %v1485_v26  ;;  %vm1368_vm3 = vcmp.ne.s32.totalorder %v964_v25, 15 }
 0x12d   : > { %1700 = vrot.lane.b32.xlu0 %v1629_v54, %s2831_s21  ;;  %v3426_v35 = vpack.c.b16 %v1522_v17, %v1521_v22 }
 0x12e   : > { %v1234_v14 = vrot.slane %v3408_v62, 1  ;;  %v1173_v50 = vrot.slane %v3408_v62, 7  ;;  %v1467_v60 = vpack.c.bf16 %v3408_v62, %v3408_v62  ;;  %v720_v62 = vadd.s32 88, %v3185_v12 }
 0x130   : > { %v1235_v15 = vsel %vm1218_vm4, %v1232_v10, %v1234_v14  ;;  %v1563_v48 = vunpack.c.l.b16 %v1467_v60  ;;  %v1174_v55 = vsel %vm1157_vm2, %v1171_v58, %v1173_v50  ;;  %v723_v10 = vadd.s32 112, %v3185_v12 }
 0x131   : > { %v660_v4 = vpop.f32.mrf.mxu0  ;;  %v1426_v19 = vsel %vm1366_vm15, %v1235_v15, 0.0  ;;  %vm1869_vm15 = vcmask 195584  }
 0x132   : > { %v1486_v23 = vpack.c.bf16 %v1426_v19, %v1426_v19  ;;  %v661_v24 = vadd.f32 %v3182_v7, %v660_v4  ;;  %v1347_v4 = vsel %vm1287_vm1, %v1174_v55, 0.0  ;;  %v999_v9 = vand.u32 15, %v723_v10 }
 0x133   : > { %v1447_v8 = vpack.c.bf16 %v1347_v4, %v1347_v4  ;;  %vm1886_vm1 = vcmask 228352  }
 0x134   : > { %1719 = vrot.lane.b32.xlu2 %v3397_v42, %s2832_s14  ;;  %1761 = vrot.lane.b32.xlu1 %v1629_v54, %s2829_s20  ;;  %v1618_v29 = vunpack.c.l.b16 %v1486_v23  ;;  %v3434_v30 = vmax.f32 %v661_v24, 0.0  ;;  %vm1293_vm5 = vcmp.ne.s32.totalorder %v999_v9, 0 }
 0x135   : > { %1585 = vrot.lane.b32.xlu0 %v1574_v11, %s2825_s6  ;;  %v1523_v17 = vunpack.c.l.b16 %v1447_v8 }
 0x136   : > { %v1468_v34 = vpack.c.bf16 %v3434_v30, %v3434_v30  ;;  %v1630_v36 = vpack.c.b16 %v1618_v29, %v1617_v31  ;;  %v1175_v37 = vrot.slane %v3434_v30, 7  ;;  %v1236_v5 = vrot.slane %v3434_v30, 1 }
 0x137   : > { %v719_v29 = vadd.s32 80, %v3185_v12 }
 0x138   : > { %v1176_v2 = vsel %vm1157_vm2, %v1173_v50, %v1175_v37  ;;  %v1237_v19 = vsel %vm1218_vm4, %v1234_v14, %v1236_v5 }
 0x139   : > { %v663_v20 = vpop.f32.mrf.mxu0  ;;  %v1448_v49 = vpack.c.bf16 %v1176_v2, %v1176_v2  ;;  %v1487_v51 = vpack.c.bf16 %v1237_v19, %v1237_v19  ;;  %v971_v60 = vand.u32 15, %v719_v29 }
 0x13a   : > { %v664_v3 = vadd.f32 %v3182_v7, %v663_v20 }
 0x13b   : > { %v1619_v50 = vunpack.c.l.b16 %v1487_v51  ;;  %vm1289_vm6 = vcmp.ne.s32.totalorder %v971_v60, 0  ;;  %v685_v60 = vpop.f32.mrf.mxu3 }
 0x13c   : > { %1639 = vrot.lane.b32.xlu2 %v1629_v54, %s2828_s15  ;;  %1681 = vrot.lane.b32.xlu1 %v1574_v11, %s2827_s0  ;;  %v3443_v40 = vmax.f32 %v664_v3, 0.0  ;;  %v1564_v54 = vunpack.c.l.b16 %v1468_v34  ;;  %v978_v34 = vand.u32 15, %v720_v62 }
 0x13d   : > { %1660 = vrot.lane.b32.xlu0 %v3426_v35, %s2830_s4 }
 0x13e   : > { %v1238_v59 = vrot.slane %v3443_v40, 1  ;;  %v1575_v41 = vpack.c.b16 %v1564_v54, %v1563_v48  ;;  %v1177_v44 = vrot.slane %v3443_v40, 7  ;;  %v1469_v2 = vpack.c.bf16 %v3443_v40, %v3443_v40 }
 0x13f   : > { %vm1370_vm7 = vcmp.ne.s32.totalorder %v978_v34, 15  ;;  %v721_v40 = vadd.s32 96, %v3185_v12  ;;  %v722_v34 = vadd.s32 104, %v3185_v12 }
 0x140   : > { %v1239_v58 = vsel %vm1218_vm4, %v1236_v5, %v1238_v59  ;;  %v1178_v8 = vsel %vm1157_vm2, %v1175_v37, %v1177_v44 }
 0x141   : > { %v665_v6 = vpop.f32.mrf.mxu0  ;;  %v1428_v13 = vsel %vm1368_vm3, %v1239_v58, 0.0  ;;  %v985_v62 = vand.u32 15, %v721_v40  ;;  %vm1903_vm3 = vcmask 261120  }
 0x142   : > { %v1488_v22 = vpack.c.bf16 %v1428_v13, %v1428_v13  ;;  %v666_v23 = vadd.f32 %v3182_v7, %v665_v6 }
 0x143   : > { %vm1291_vm8 = vcmp.ne.s32.totalorder %v985_v62, 0 }
 0x144   : > { %1742 = vrot.lane.b32.xlu2 %v1574_v11, %s2826_s3  ;;  %1721 = vrot.lane.b32.xlu1 %v3426_v35, %s2832_s14  ;;  %v1524_v11 = vunpack.c.l.b16 %v1448_v49  ;;  %v1620_v6 = vunpack.c.l.b16 %v1488_v22  ;;  %v699_v31 = vmax.f32 %v666_v23, 0.0  ;;  %v1565_v49 = vunpack.c.l.b16 %v1469_v2 }
 0x145   : > { %1763 = vrot.lane.b32.xlu0 %v1630_v36, %s2829_s20 }
 0x146   : > { %v3469_v24 = vpack.c.b16 %v1524_v11, %v1523_v17  ;;  %v1240_v48 = vrot.slane %v699_v31, 1  ;;  %v1470_v25 = vpack.c.bf16 %v699_v31, %v699_v31  ;;  %v1631_v57 = vpack.c.b16 %v1620_v6, %v1619_v50 }
 0x147   : > { %v1179_v5 = vrot.slane %v699_v31, 7 }
 0x148   : > { %v1566_v58 = vunpack.c.l.b16 %v1470_v25  ;;  %v1241_v13 = vsel %vm1218_vm4, %v1238_v59, %v1240_v48  ;;  %v686_v25 = vadd.f32 %v3182_v7, %v685_v60 }
 0x149   : > { %v668_v28 = vpop.f32.mrf.mxu0  ;;  %v1180_v11 = vsel %vm1157_vm2, %v1177_v44, %v1179_v5 }
 0x14a   : > { %v669_v0 = vadd.f32 %v3182_v7, %v668_v28  ;;  %v1576_v17 = vpack.c.b16 %v1566_v58, %v1565_v49  ;;  %v1450_v19 = vpack.c.bf16 %v1180_v11, %v1180_v11  ;;  %v707_v58 = vmax.f32 %v686_v25, 0.0 }
 0x14c   : > { %1702 = vrot.lane.b32.xlu2 %v1630_v36, %s2831_s21  ;;  %1641 = vrot.lane.b32.xlu1 %v1630_v36, %s2828_s15  ;;  %v3477_v14 = vmax.f32 %v669_v0, 0.0  ;;  %v1526_v9 = vunpack.c.l.b16 %v1450_v19  ;;  %v1193_v19 = vrot.slane %v3341_v43, 7 }
 0x14d   : > { %1683 = vrot.lane.b32.xlu0 %v1575_v41, %s2827_s0 }
 0x14e   : > { %v1242_v54 = vrot.slane %v3477_v14, 1  ;;  %v1181_v6 = vrot.slane %v3477_v14, 7  ;;  %v1471_v31 = vpack.c.bf16 %v3477_v14, %v3477_v14  ;;  %v1924_v14 = vld [vmem:[%s3945_s7 + $0x10] sm:$0x3] }
 0x14f   : > { %v1938_v40 = vunpack.c.l.b16 %v1924_v14 }
 0x150   : > { %v1182_v2 = vsel %vm1157_vm2, %v1179_v5, %v1181_v6 }
 0x151   : > { %v670_v15 = vpop.f32.mrf.mxu0 }
 0x152   : > { %v671_v20 = vadd.f32 %v3182_v7, %v670_v15  ;;  %v1349_v15 = vsel %vm1289_vm6, %v1178_v8, 0.0  ;;  %v727_v8 = vadd.s32 144, %v3185_v12 }
 0x153   : > { %v1449_v30 = vpack.c.bf16 %v1349_v15, %v1349_v15 }
 0x154   : > { %v3471_v26 = vmax.f32 %v671_v20, 0.0  ;;  %1587 = vrot.lane.b32.xlu2 %v1575_v41, %s2825_s6  ;;  %1744 = vrot.lane.b32.xlu1 %v1575_v41, %s2826_s3  ;;  %v1243_v41 = vsel %vm1218_vm4, %v1240_v48, %v1242_v54  ;;  %v1489_v20 = vpack.c.bf16 %v1241_v13, %v1241_v13  ;;  %v1567_v48 = vunpack.c.l.b16 %v1471_v31 }
 0x155   : > { %1723 = vrot.lane.b32.xlu0 %v3469_v24, %s2832_s14  ;;  %v1430_v0 = vsel %vm1370_vm7, %v1243_v41, 0.0  ;;  %v1525_v51 = vunpack.c.l.b16 %v1449_v30 }
 0x156   : > { %v1183_v3 = vrot.slane %v3471_v26, 7  ;;  %v1490_v22 = vpack.c.bf16 %v1430_v0, %v1430_v0  ;;  %v1621_v23 = vunpack.c.l.b16 %v1489_v20  ;;  %v3549_v0 = vsel %vm3309_vm10, %v707_v58, 0.0 }
 0x157   : > { %v3515_v29 = vpack.c.b16 %v1526_v9, %v1525_v51  ;;  %v1027_v20 = vand.u32 15, %v727_v8  ;;  %v1194_v51 = vsel %vm1157_vm2, %v1191_v56, %v1193_v19  ;;  %v1256_v60 = vrot.slane %v3549_v0, 1 }
 0x158   : > { %v1186_v36 = vsel %vm1157_vm2, %v1183_v3, %v1185_v47  ;;  %v1530_v47 = vunpack.c.l.b16 %v1454_v32  ;;  %v1622_v59 = vunpack.c.l.b16 %v1490_v22  ;;  %v1472_v32 = vpack.c.bf16 %v3471_v26, %v3471_v26 }
 0x159   : > { %v1353_v55 = vsel %vm1293_vm5, %v1186_v36, 0.0  ;;  %v1195_v22 = vrot.slane %v3549_v0, 7  ;;  %vm1297_vm10 = vcmp.ne.s32.totalorder %v1027_v20, 0  ;;  %v1278_v25 = vsel %vm1218_vm4, %v1256_v60, 0.0 }
 0x15a   : > { %v1453_v28 = vpack.c.bf16 %v1353_v55, %v1353_v55  ;;  %v1632_v50 = vpack.c.b16 %v1622_v59, %v1621_v23  ;;  %v1568_v55 = vunpack.c.l.b16 %v1472_v32  ;;  %vm1944_vm5 = vcmask 293888  }
 0x15b   : > { %v1196_v32 = vsel %vm1157_vm2, %v1193_v19, %v1195_v22 }
 0x15c   : > { %1662 = vrot.lane.b32.xlu2 %v3469_v24, %s2830_s4  ;;  %1704 = vrot.lane.b32.xlu1 %v1631_v57, %s2831_s21  ;;  %v1529_v4 = vunpack.c.l.b16 %v1453_v28  ;;  %v1244_v28 = vrot.slane %v3471_v26, 1  ;;  %v1577_v41 = vpack.c.b16 %v1568_v55, %v1567_v48  ;;  %v1458_v55 = vpack.c.bf16 %v1196_v32, %v1196_v32 }
 0x15d   : > { %1643 = vrot.lane.b32.xlu0 %v1631_v57, %s2828_s15 }
 0x15e   : > { %v3503_v10 = vpack.c.b16 %v1530_v47, %v1529_v4  ;;  %v992_v4 = vand.u32 15, %v722_v34  ;;  %v1351_v47 = vsel %vm1291_vm8, %v1182_v2, 0.0  ;;  %v1247_v7 = vsel %vm1218_vm4, %v1244_v28, %v1246_v18 }
 0x15f   : > { %v1451_v5 = vpack.c.bf16 %v1351_v47, %v1351_v47  ;;  %v1245_v27 = vsel %vm1218_vm4, %v1242_v54, %v1244_v28  ;;  %v728_v54 = vadd.s32 152, %v3185_v12  ;;  %v1357_v12 = vsel %vm1297_vm10, %v1194_v51, 0.0  ;;  %v2403_v47 = vld [vmem:[%s3945_s7] sm:$0xff] }
 0x160   : > { %vm1372_vm9 = vcmp.ne.s32.totalorder %v992_v4, 15  ;;  %v1491_v9 = vpack.c.bf16 %v1245_v27, %v1245_v27  ;;  %v1457_v2 = vpack.c.bf16 %v1357_v12, %v1357_v12  ;;  %v1717_v4 = vunpack.c.l.b16 %v1458_v55 }
 0x161   : > { %v1432_v18 = vsel %vm1372_vm9, %v1247_v7, 0.0  ;;  %v1034_v34 = vand.u32 15, %v728_v54  ;;  %v1257_v7 = vsel %vm1218_vm4, %v1254_v38, %v1256_v60  ;;  %v1478_v27 = vpack.c.bf16 %v3549_v0, %v3549_v0 }
 0x162   : > { %v1492_v1 = vpack.c.bf16 %v1432_v18, %v1432_v18  ;;  %vm1852_vm4 = vcmask 162816  }
 0x163   : > { %vm1378_vm13 = vcmp.ne.s32.totalorder %v1034_v34, 15 }
 0x164   : > { %1765 = vrot.lane.b32.xlu2 %v1631_v57, %s2829_s20  ;;  %1589 = vrot.lane.b32.xlu1 %v1576_v17, %s2825_s6  ;;  %v1184_v57 = vsel %vm1157_vm2, %v1181_v6, %v1183_v3  ;;  %v1623_v6 = vunpack.c.l.b16 %v1491_v9  ;;  %v1624_v31 = vunpack.c.l.b16 %v1492_v1  ;;  %vm1819_vm2 = vcmask 97280  }
 0x165   : > { %1746 = vrot.lane.b32.xlu0 %v1576_v17, %s2826_s3  ;;  %v1452_v49 = vpack.c.bf16 %v1184_v57, %v1184_v57  ;;  %v1438_v8 = vsel %vm1378_vm13, %v1278_v25, 0.0 }
 0x166   : > { %v3512_v37 = vpop.permute.xlu2 %1581  ;;  %v1633_v56 = vpack.c.b16 %v1624_v31, %v1623_v6 }
 0x167   : > { %v1528_v13 = vunpack.c.l.b16 %v1452_v49 }
 0x16c   : > { %1685 = vrot.lane.b32.xlu2 %v1576_v17, %s2827_s0  ;;  %1664 = vrot.lane.b32.xlu1 %v3515_v29, %s2830_s4  ;;  %v1527_v17 = vunpack.c.l.b16 %v1451_v5  ;;  %v1716_v5 = vunpack.c.l.b16 %v1457_v2 }
 0x16d   : > { %1706 = vrot.lane.b32.xlu0 %v1632_v50, %s2831_s21 }
 0x16e   : > { %v3527_v36 = vpop.permute.xlu2 %1771  ;;  %v3558_v30 = vpack.c.b16 %v1528_v13, %v1527_v17  ;;  %v1477_v13 = vpack.c.bf16 %v3341_v43, %v3341_v43  ;;  %v1718_v18 = vpack.c.b16 %v1717_v4, %v1716_v5  ;;  %v1738_v17 = vunpack.c.l.b16 %v1478_v27 }
 0x16f   : > { %v3529_v44 = vpop.permute.xlu0 %1579 }
 0x170   : > { %v1737_v38 = vunpack.c.l.b16 %v1477_v13  ;;  %v1780_v51 = vsel %vm1777_vm11, %v1531_v53, %v3529_v44 }
 0x172   : > { %v1739_v9 = vpack.c.b16 %v1738_v17, %v1737_v38 }
 0x174   : > { %1725 = vrot.lane.b32.xlu2 %v3515_v29, %s2832_s14  ;;  %1767 = vrot.lane.b32.xlu1 %v1632_v50, %s2829_s20  ;;  %v3544_v3 = vpop.permute.xlu1 %1750 }
 0x175   : > { %1591 = vrot.lane.b32.xlu0 %v1577_v41, %s2825_s6  ;;  %s2168_s6 = scalar_lea.sflag [#allocation4], %s3119_s25 }
 0x176   : > { %v1671_v26 = vpop.permute.xlu2 %1670 }
 0x177   : > { %v1594_v11 = vpop.permute.xlu0 %1593 }
 0x178   : > { %v1801_v15 = vsel %vm1777_vm11, %v3503_v10, %v1594_v11 }
 0x17c   : > { %1645 = vrot.lane.b32.xlu2 %v1632_v50, %s2828_s15  ;;  %1687 = vrot.lane.b32.xlu1 %v1577_v41, %s2827_s0  ;;  %v1941_v50 = vpack.c.b16 %v1938_v40, %v1938_v40 }
 0x17d   : > { %1666 = vrot.lane.b32.xlu0 %v3558_v30, %s2830_s4 }
 0x17e   : > { %v3568_v23 = vpop.permute.xlu1 %1677  ;;  %v3570_v59 = vpop.permute.xlu2 %1698  ;;  %v1963_v48 = vsel %vm1961_vm12, %v1941_v50, 0 }
 0x17f   : > { %v1636_v62 = vpop.permute.xlu0 %1635  ;;  %1970 = vmatpush.bf16.msra.mxu1 %v1963_v48  ;;  %2407 = vmatpush.bf16.msrb.mxu3 %v1963_v48 }
 0x180   : > { %v1804_v6 = vsel %vm1802_vm14, %v1780_v51, %v1636_v62 }
 0x183   : > { %1971 = vmatpush.bf16.msra.mxu1 %v2404_v39  ;;  %2408 = vmatpush.bf16.msrb.mxu3 %v2404_v39 }
 0x184   : > { %1748 = vrot.lane.b32.xlu2 %v1577_v41, %s2826_s3  ;;  %1727 = vrot.lane.b32.xlu1 %v3558_v30, %s2832_s14 }
 0x185   : > { %1769 = vrot.lane.b32.xlu0 %v1633_v56, %s2829_s20 }
 0x186   : > { %v1650_v57 = vpop.permute.xlu1 %1649  ;;  %v3586_v28 = vpop.permute.xlu2 %1679 }
 0x187   : > { %v1818_v41 = vsel %vm1802_vm14, %v1801_v15, %v1650_v57  ;;  %v1692_v49 = vpop.permute.xlu0 %1691  ;;  %1972 = vmatpush.bf16.msra.mxu1 %v2403_v47  ;;  %2409 = vmatpush.bf16.msrb.mxu3 %v2403_v47  ;;  %v1497_v15 = vpack.c.bf16 %v1257_v7, %v1257_v7 }
 0x188   : > { %v1835_v58 = vsel %vm1819_vm2, %v1818_v41, %v1671_v26  ;;  %v1498_v26 = vpack.c.bf16 %v1438_v8, %v1438_v8 }
 0x189   : > { %v3597_v11 = vsel %vm598_vm0, %v1835_v58, %v1692_v49  ;;  %v1758_v22 = vunpack.c.l.b16 %v1497_v15 }
 0x18a   : > { %v1759_v0 = vunpack.c.l.b16 %v1498_v26 }
 0x18c   : > { %1733 = vrot.lane.b32.xlu2 %v1718_v18, %s2832_s14  ;;  %1712 = vrot.lane.b32.xlu1 %v3394_v33, %s2831_s21  ;;  %v1760_v1 = vpack.c.b16 %v1759_v0, %v1758_v22 }
 0x18d   : > { %1729 = vrot.lane.b32.xlu0 %v3503_v10, %s2832_s14 }
 0x18e   : > { %v1720_v19 = vpop.permute.xlu2 %1719  ;;  %v1657_v43 = vpop.permute.xlu1 %1656 }
 0x18f   : > { %v1638_v20 = vpop.permute.xlu0 %1637  ;;  %v1821_v31 = vsel %vm1819_vm2, %v1804_v6, %v1657_v43 }
 0x190   : > { %v1837_v45 = vsel %vm598_vm0, %v1821_v31, %v3568_v23 }
 0x191   : > { %v1854_v53 = vsel %vm1852_vm4, %v1837_v45, %v3570_v59 }
 0x194   : > { %1708 = vrot.lane.b32.xlu2 %v1633_v56, %s2831_s21  ;;  %1754 = vrot.lane.b32.xlu1 %v1739_v9, %s2826_s3 }
 0x195   : > { %1775 = vrot.lane.b32.xlu0 %v1760_v1, %s2829_s20 }
 0x196   : > { %v1640_v14 = vpop.permute.xlu2 %1639  ;;  %v1584_v54 = vpop.permute.xlu1 %1583 }
 0x197   : > { %v1741_v40 = vpop.permute.xlu0 %1740 }
 0x19c   : > { %1689 = vrot.lane.b32.xlu2 %v3236_v63, %s2827_s0  ;;  %1668 = vrot.lane.b32.xlu1 %v3503_v10, %s2830_s4  ;;  %v1871_v63 = vsel %vm1869_vm15, %v1854_v53, %v1720_v19  ;;  %s3948_s4 = sld [smem:[#allocation33_spill]] }
 0x19d   : > { %1710 = vrot.lane.b32.xlu0 %v3327_v16, %s2831_s21  ;;  %v1888_v16 = vsel %vm1886_vm1, %v1871_v63, %v1741_v40  ;;  %s3733_s21 = scalar_lea.vmem [#allocation8], %s2352_s24  ;;  %s3949_s24 = sld [smem:[#allocation17_spill]] }
 0x19e   : > { %v1743_v32 = vpop.permute.xlu2 %1742  ;;  %v1659_v50 = vpop.permute.xlu1 %1658  ;;  %s2183_s18 = sshll.u32 %s3733_s21, 4  ;;  %s2184_s18 = int_to_ptr.vmem [resolvable:$true] %s2183_s18 }
 0x19f   : > { %v1701_v46 = vpop.permute.xlu0 %1700 }
 0x1a3   : > { %s2397_s19 = sshll.u32 %s3949_s24, 5 }
 0x1a4   : > { %1647 = vrot.lane.b32.xlu2 %v1633_v56, %s2828_s15  ;;  %1731 = vrot.lane.b32.xlu1 %v3357_v61, %s2832_s14  ;;  %v1783_v61 = vsel %vm1777_vm11, %v3352_v52, %v3512_v37  ;;  %v1786_v37 = vsel %vm1777_vm11, %v3397_v42, %v1584_v54  ;;  %s2405_s14 = sshll.u32 %s3935_s17, 4 }
 0x1a5   : > { %1773 = vrot.lane.b32.xlu0 %v3394_v33, %s2829_s20  ;;  %v1806_v33 = vsel %vm1802_vm14, %v1783_v61, %v1638_v20  ;;  %s2180_s5 = sadd.s32 %s2405_s14, %s2397_s19 }
 0x1a6   : > { %v1703_v10 = vpop.permute.xlu2 %1702  ;;  %v1762_v44 = vpop.permute.xlu1 %1761  ;;  %v1823_v34 = vsel %vm1819_vm2, %v1806_v33, %v1659_v50  ;;  %s2398_s23 = sshll.u32 %s2180_s5, 3 }
 0x1a7   : > { %v1586_v23 = vpop.permute.xlu0 %1585  ;;  %v1905_v59 = vsel %vm1903_vm3, %v1888_v16, %v1762_v44  ;;  %v1839_v48 = vsel %vm598_vm0, %v1823_v34, %v3586_v28  ;;  %v1808_v28 = vsel %vm1802_vm14, %v1786_v37, %v1640_v14  ;;  %s2182_s12 = scalar_lea.hbm %s3950_s30, %s2398_s23 }
 0x1a8   : > { %2378 = vmatmul.msk.bf16.vlgmr.msra.gmra.mxu1 %vm1944_vm5, %v1905_v59  ;;  %v1856_v55 = vsel %vm1852_vm4, %v1839_v48, %v1701_v46  ;;  %v1789_v19 = vsel %vm1777_vm11, %v3426_v35, %v1586_v23 }
 0x1ac   : > { %1752 = vrot.lane.b32.xlu2 %v3332_v21, %s2826_s3 }
 0x1ae   : > { %v1588_v62 = vpop.permute.xlu2 %1587  ;;  %v1682_v60 = vpop.permute.xlu1 %1681 }
 0x1af   : > { %v1661_v12 = vpop.permute.xlu0 %1660 }
 0x1b0   : > { %v1825_v41 = vsel %vm1819_vm2, %v1808_v28, %v1661_v12 }
 0x1b1   : > { %v1841_v49 = vsel %vm598_vm0, %v1825_v41, %v1682_v60 }
 0x1b2   : > { %v1858_v7 = vsel %vm1852_vm4, %v1841_v49, %v1703_v10 }
 0x1b6   : > { %v1663_v39 = vpop.permute.xlu2 %1662  ;;  %v1722_v56 = vpop.permute.xlu1 %1721 }
 0x1b7   : > { %v1873_v21 = vsel %vm1869_vm15, %v1856_v55, %v1722_v56  ;;  %v1764_v2 = vpop.permute.xlu0 %1763 }
 0x1b8   : > { %v1890_v25 = vsel %vm1886_vm1, %v1873_v21, %v1743_v32  ;;  %v1792_v32 = vsel %vm1777_vm11, %v3469_v24, %v1588_v62 }
 0x1b9   : > { %v1907_v52 = vsel %vm1903_vm3, %v1890_v25, %v1764_v2 }
 0x1ba   : > { %2379 = vmatmul.msk.bf16.gmra.mxu1 %vm1944_vm5, %v1907_v52 }
 0x1be   : > { %v1766_v57 = vpop.permute.xlu2 %1765  ;;  %v1642_v4 = vpop.permute.xlu1 %1641 }
 0x1bf   : > { %v1684_v47 = vpop.permute.xlu0 %1683  ;;  %v1810_v20 = vsel %vm1802_vm14, %v1789_v19, %v1642_v4 }
 0x1c0   : > { %v1827_v22 = vsel %vm1819_vm2, %v1810_v20, %v1663_v39 }
 0x1c1   : > { %v1843_v1 = vsel %vm598_vm0, %v1827_v22, %v1684_v47 }
 0x1c6   : > { %v1686_v58 = vpop.permute.xlu2 %1685  ;;  %v1745_v5 = vpop.permute.xlu1 %1744 }
 0x1c7   : > { %v1724_v8 = vpop.permute.xlu0 %1723 }
 0x1c8   : > { %v1875_v13 = vsel %vm1869_vm15, %v1858_v7, %v1724_v8 }
 0x1c9   : > { %v1892_v27 = vsel %vm1886_vm1, %v1875_v13, %v1745_v5  ;;  %v2038_v5 = vld [vmem:[%s3946_s28] sm:$0x3]  ;;  %s2185_s28 = sshll.u32 %s2182_s12, 4  ;;  %s2186_s28 = int_to_ptr.hbm [resolvable:$true] %s2185_s28 }
 0x1ca   : > { %v1909_v42 = vsel %vm1903_vm3, %v1892_v27, %v1766_v57  ;;  %s2681_s3 = sshra.s32 %s2186_s28, 4  ;;  %s2682_s3 = int_to_ptr.hbm [resolvable:$true] %s2681_s3 }
 0x1cb   : > { %2380 = vmatmul.msk.bf16.gmra.mxu1 %vm1944_vm5, %v1909_v42  ;;  %p2688_p8 = scmp.lt.s32.totalorder %s2682_s3, %s3951_s9 }
 0x1ce   : > { %v1705_v18 = vpop.permute.xlu1 %1704  ;;  %v1726_v26 = vpop.permute.xlu2 %1725 }
 0x1cf   : > { %v1644_v15 = vpop.permute.xlu0 %1643  ;;  %v1860_v14 = vsel %vm1852_vm4, %v1843_v1, %v1705_v18 }
 0x1d0   : > { %v1877_v40 = vsel %vm1869_vm15, %v1860_v14, %v1726_v26  ;;  %v1812_v46 = vsel %vm1802_vm14, %v1792_v32, %v1644_v15 }
 0x1d6   : > { %v1590_v38 = vpop.permute.xlu1 %1589  ;;  %v1646_v43 = vpop.permute.xlu2 %1645 }
 0x1d7   : > { %v1747_v17 = vpop.permute.xlu0 %1746  ;;  %v1795_v61 = vsel %vm1777_vm11, %v3515_v29, %v1590_v38  ;;  %v2559_v38 = vld [vmem:[%s3947_s1] ss:$0 sm:$0xff]  ;;  %s2683_s1 = scalar_lea.hbm %s2682_s3, 128 }
 0x1d8   : > { %v1894_v51 = vsel %vm1886_vm1, %v1877_v40, %v1747_v17  ;;  %v1814_v33 = vsel %vm1802_vm14, %v1795_v61, %v1646_v43  ;;  %p2684_p7 = scmp.ne.s32.totalorder %s2682_s3, %s2683_s1 }
 0x1da   : > { %p2685_p3 = pnand %p2684_p7, %p3055_p4 }
 0x1dc   : > { %p2686_p5 = pneg %p2685_p3 }
 0x1de   : > { %v1665_v0 = vpop.permute.xlu1 %1664  ;;  %v1749_v54 = vpop.permute.xlu2 %1748 }
 0x1df   : > { %v1707_v9 = vpop.permute.xlu0 %1706  ;;  %v1829_v63 = vsel %vm1819_vm2, %v1812_v46, %v1665_v0 }
 0x1e0   : > { %v1845_v16 = vsel %vm598_vm0, %v1829_v63, %v1686_v58 }
 0x1e1   : > { %v1862_v10 = vsel %vm1852_vm4, %v1845_v16, %v1707_v9 }
 0x1e6   : > { %v1768_v6 = vpop.permute.xlu1 %1767  ;;  %v1734_v50 = vpop.permute.xlu2 %1733 }
 0x1e7   : > { %v1592_v31 = vpop.permute.xlu0 %1591  ;;  %v1911_v35 = vsel %vm1903_vm3, %v1894_v51, %v1768_v6 }
 0x1e8   : > { %2381 = vmatmul.msk.bf16.gmra.mxu1 %vm1944_vm5, %v1911_v35  ;;  %v1798_v28 = vsel %vm1777_vm11, %v3558_v30, %v1592_v31 }
 0x1ee   : > { %v1688_v45 = vpop.permute.xlu1 %1687  ;;  %v1709_v60 = vpop.permute.xlu2 %1708 }
 0x1ef   : > { %v1667_v53 = vpop.permute.xlu0 %1666 }
 0x1f0   : > { %v1831_v12 = vsel %vm1819_vm2, %v1814_v33, %v1667_v53 }
 0x1f1   : > { %v1847_v48 = vsel %vm598_vm0, %v1831_v12, %v1688_v45 }
 0x1f2   : > { %v1864_v56 = vsel %vm1852_vm4, %v1847_v48, %v1709_v60 }
 0x1f6   : > { %v1728_v44 = vpop.permute.xlu1 %1727  ;;  %v1690_v39 = vpop.permute.xlu2 %1689 }
 0x1f7   : > { %v1879_v23 = vsel %vm1869_vm15, %v1862_v10, %v1728_v44  ;;  %v1770_v59 = vpop.permute.xlu0 %1769 }
 0x1f8   : > { %v1896_v24 = vsel %vm1886_vm1, %v1879_v23, %v1749_v54 }
 0x1f9   : > { %v1913_v62 = vsel %vm1903_vm3, %v1896_v24, %v1770_v59 }
 0x1fa   : > { %2382 = vmatmul.msk.bf16.gmra.mxu1 %vm1944_vm5, %v1913_v62 }
 0x1fe   : > { %v1713_v34 = vpop.permute.xlu1 %1712 }
 0x1ff   : > { %v1730_v55 = vpop.permute.xlu0 %1729  ;;  %v1868_v29 = vsel %vm1852_vm4, %v3597_v11, %v1713_v34  ;;  %v1648_v11 = vpop.permute.xlu2 %1647 }
 0x200   : > { %v1881_v21 = vsel %vm1869_vm15, %v1864_v56, %v1730_v55  ;;  %v1885_v25 = vsel %vm1869_vm15, %v1868_v29, %v1734_v50  ;;  %v1816_v49 = vsel %vm1802_vm14, %v1798_v28, %v1648_v11 }
 0x201   : > { %v1898_v52 = vsel %vm1886_vm1, %v1881_v21, %v3544_v3 }
 0x202   : > { %v1915_v47 = vsel %vm1903_vm3, %v1898_v52, %v3527_v36  ;;  %v2068_v36 = vsel %vm1961_vm12, %v2038_v5, 0 }
 0x203   : > { %2077 = vmatpush.bf16.msra.mxu2 %v2068_v36  ;;  %2410 = vmatpush.bf16.msra.mxu3 %v2068_v36 }
 0x206   : > { %v1755_v2 = vpop.permute.xlu1 %1754 }
 0x207   : > { %v1902_v37 = vsel %vm1886_vm1, %v1885_v25, %v1755_v2  ;;  %v1776_v57 = vpop.permute.xlu0 %1775  ;;  %v1753_v30 = vpop.permute.xlu2 %1752 }
 0x208   : > { %v1919_v4 = vsel %vm1903_vm3, %v1902_v37, %v1776_v57 }
 0x209   : > { %2385 = vmatmul.msk.bf16.vlgmr.msrb.gmra.mxu3 %vm1944_vm5, %v1919_v4 }
 0x20a   : > { %2383 = vmatmul.msk.bf16.gmra.mxu1 %vm1944_vm5, %v1915_v47 }
 0x20e   : > { %v1669_v41 = vpop.permute.xlu1 %1668 }
 0x20f   : > { %v1711_v3 = vpop.permute.xlu0 %1710  ;;  %v1833_v58 = vsel %vm1819_vm2, %v1816_v49, %v1669_v41 }
 0x210   : > { %v1849_v7 = vsel %vm598_vm0, %v1833_v58, %v1690_v39 }
 0x211   : > { %v1866_v8 = vsel %vm1852_vm4, %v1849_v7, %v1711_v3 }
 0x216   : > { %v1732_v13 = vpop.permute.xlu1 %1731 }
 0x217   : > { %v1883_v27 = vsel %vm1869_vm15, %v1866_v8, %v1732_v13  ;;  %v1774_v42 = vpop.permute.xlu0 %1773  ;;  %v3727_v8 = vld [vmem:[%s3948_s4] ss:$0 sm:$0xff]  ;;  %s2687_s4 = scalar_lea.hbm %s3951_s9, 512 }
 0x218   : > { %v1900_v18 = vsel %vm1886_vm1, %v1883_v27, %v1753_v30  ;;  %v2561_v27 = vld [vmem:[%s3125_s26] sm:$0xff]  ;;  %p2689_p9 = scmp.lt.s32.totalorder %s2687_s4, %s2683_s1 }
 0x219   : > { %v1917_v15 = vsel %vm1903_vm3, %v1900_v18, %v1774_v42 }
 0x21a   : > { %2384 = vmatmul.msk.bf16.gmra.mxu1 %vm1944_vm5, %v1917_v15  ;;  %p2690_p10 = por %p2689_p9, %p2688_p8 }
 0x21c   : > { %p2691_p12 = pnand %p2690_p10, %p2686_p5 }
 0x225   : > { %v1974_v26 = vpop.f32.mrf.mxu1 }
 0x226   : > { %v1975_v17 = vadd.f32 %v2559_v38, %v1974_v26 }
 0x228   : > { %v2014_v20 = vmax.f32 %v1975_v17, 0.0 }
 0x22d   : > { %v1976_v19 = vpop.f32.mrf.mxu1 }
 0x22e   : > { %v1977_v43 = vadd.f32 %v2559_v38, %v1976_v19 }
 0x230   : > { %v2015_v22 = vmax.f32 %v1977_v43, 0.0 }
 0x232   : > { %v2030_v0 = vpack.c.bf16 %v2015_v22, %v2014_v20  ;;  %v2563_v22 = vld [vmem:[%s3125_s26 + $0x10] sm:$0xff] }
 0x234   : > { %2386 = vmatmul.msk.bf16.vlgmr.msra.gmra.mxu2 %vm1777_vm11, %v2030_v0 }
 0x237   : > { %v1979_v9 = vpop.f32.mrf.mxu1 }
 0x238   : > { %v1980_v1 = vadd.f32 %v2559_v38, %v1979_v9 }
 0x23a   : > { %v2016_v40 = vmax.f32 %v1980_v1, 0.0 }
 0x23f   : > { %v1981_v14 = vpop.f32.mrf.mxu1 }
 0x240   : > { %v1982_v54 = vadd.f32 %v2559_v38, %v1981_v14 }
 0x242   : > { %v2017_v51 = vmax.f32 %v1982_v54, 0.0  ;;  %v2564_v54 = vld [vmem:[%s3125_s26 + $0x18] sm:$0xff] }
 0x244   : > { %v2031_v6 = vpack.c.bf16 %v2017_v51, %v2016_v40 }
 0x246   : > { %2387 = vmatmul.msk.bf16.gmra.mxu2 %vm1777_vm11, %v2031_v6 }
 0x248   : > { %v1984_v31 = vpop.f32.mrf.mxu1 }
 0x249   : > { %v1985_v35 = vadd.f32 %v2559_v38, %v1984_v31 }
 0x24b   : > { %v2018_v45 = vmax.f32 %v1985_v35, 0.0  ;;  %v2565_v35 = vld [vmem:[%s3125_s26 + $0x20] sm:$0xff] }
 0x250   : > { %v1986_v32 = vpop.f32.mrf.mxu1 }
 0x251   : > { %v1987_v50 = vadd.f32 %v2559_v38, %v1986_v32 }
 0x253   : > { %v2019_v46 = vmax.f32 %v1987_v50, 0.0 }
 0x255   : > { %v2032_v53 = vpack.c.bf16 %v2019_v46, %v2018_v45 }
 0x257   : > { %2388 = vmatmul.msk.bf16.gmra.mxu2 %vm1777_vm11, %v2032_v53  ;;  %v2566_v53 = vld [vmem:[%s3125_s26 + $0x28] sm:$0xff] }
 0x265   : > { %v1989_v63 = vpop.f32.mrf.mxu1 }
 0x266   : > { %v1990_v16 = vadd.f32 %v2559_v38, %v1989_v63 }
 0x268   : > { %v2020_v23 = vmax.f32 %v1990_v16, 0.0 }
 0x26d   : > { %v1991_v10 = vpop.f32.mrf.mxu1 }
 0x26e   : > { %v1992_v44 = vadd.f32 %v2559_v38, %v1991_v10 }
 0x270   : > { %v2021_v59 = vmax.f32 %v1992_v44, 0.0 }
 0x272   : > { %v2033_v61 = vpack.c.bf16 %v2021_v59, %v2020_v23  ;;  %v2567_v23 = vld [vmem:[%s3125_s26 + $0x30] sm:$0xff] }
 0x274   : > { %2389 = vmatmul.msk.bf16.gmra.mxu2 %vm1777_vm11, %v2033_v61 }
 0x277   : > { %v1994_v60 = vpop.f32.mrf.mxu1 }
 0x278   : > { %v1995_v24 = vadd.f32 %v2559_v38, %v1994_v60 }
 0x27a   : > { %v2022_v12 = vmax.f32 %v1995_v24, 0.0 }
 0x27f   : > { %v1996_v62 = vpop.f32.mrf.mxu1 }
 0x280   : > { %v1997_v33 = vadd.f32 %v2559_v38, %v1996_v62  ;;  %v2568_v62 = vld [vmem:[%s3125_s26 + $0x38] sm:$0xff] }
 0x282   : > { %v2023_v34 = vmax.f32 %v1997_v33, 0.0 }
 0x284   : > { %v2034_v48 = vpack.c.bf16 %v2023_v34, %v2022_v12 }
 0x286   : > { %2390 = vmatmul.msk.bf16.gmra.mxu2 %vm1777_vm11, %v2034_v48 }
 0x287   : > { %v1999_v55 = vpop.f32.mrf.mxu1 }
 0x288   : > { %v2000_v56 = vadd.f32 %v2559_v38, %v1999_v55  ;;  %v2569_v55 = vld [vmem:[%s3125_s26 + $0x40] sm:$0xff] }
 0x28a   : > { %v2024_v2 = vmax.f32 %v2000_v56, 0.0 }
 0x28c   : > { %v2009_v39 = vpop.f32.mrf.mxu3 }
 0x28d   : > { %v2010_v52 = vadd.f32 %v2559_v38, %v2009_v39 }
 0x28f   : > { %v2001_v29 = vpop.f32.mrf.mxu1  ;;  %v2028_v47 = vmax.f32 %v2010_v52, 0.0 }
 0x290   : > { %v2002_v21 = vadd.f32 %v2559_v38, %v2001_v29 }
 0x292   : > { %v2025_v25 = vmax.f32 %v2002_v21, 0.0 }
 0x294   : > { %v2035_v37 = vpack.c.bf16 %v2025_v25, %v2024_v2  ;;  %v2011_v57 = vpop.f32.mrf.mxu3  ;;  %v2570_v2 = vld [vmem:[%s3125_s26 + $0x48] sm:$0xff] }
 0x295   : > { %v2012_v4 = vadd.f32 %v2559_v38, %v2011_v57 }
 0x296   : > { %2391 = vmatmul.msk.bf16.gmra.mxu2 %vm1777_vm11, %v2035_v37 }
 0x297   : > { %v2029_v11 = vmax.f32 %v2012_v4, 0.0  ;;  %v2004_v28 = vpop.f32.mrf.mxu1  ;;  %v2571_v4 = vld [vmem:[%s3125_s26 + $0x50] sm:$0xff] }
 0x298   : > { %v2005_v49 = vadd.f32 %v2559_v38, %v2004_v28 }
 0x299   : > { %v2037_v41 = vpack.c.bf16 %v2029_v11, %v2028_v47 }
 0x29a   : > { %v2026_v5 = vmax.f32 %v2005_v49, 0.0  ;;  %v2572_v49 = vld [vmem:[%s3125_s26 + $0x70] sm:$0xff] }
 0x29b   : > { %2393 = vmatmul.msk.bf16.vlgmr.msra.gmra.mxu3 %vm1777_vm11, %v2037_v41 }
 0x29f   : > { %v2006_v3 = vpop.f32.mrf.mxu1 }
 0x2a0   : > { %v2007_v58 = vadd.f32 %v2559_v38, %v2006_v3  ;;  %v2562_v38 = vld [vmem:[%s3125_s26 + $0x8] sm:$0xff] }
 0x2a2   : > { %v2027_v7 = vmax.f32 %v2007_v58, 0.0 }
 0x2a4   : > { %v2036_v36 = vpack.c.bf16 %v2027_v7, %v2026_v5 }
 0x2a6   : > { %2392 = vmatmul.msk.bf16.gmra.mxu2 %vm1777_vm11, %v2036_v36  ;;  %v2573_v36 = vld [vmem:[%s3125_s26 + $0x58] sm:$0xff] }
 0x2b7   : > { %v2079_v13 = vpop.f32.mrf.mxu2 }
 0x2b8   : > { %v2080_v30 = vadd.f32 %v3727_v8, %v2079_v13 }
 0x2ba   : > { %v2119_v42 = vadd.f32 %v2561_v27, %v2080_v30 }
 0x2bc   : > { %v2135_v18 = vmax.f32 %v2119_v42, 0.0 }
 0x2be   : > { %2151 = vst.msk [vmem:[%s3733_s21] sm:$0xff] %vm598_vm0, %v2135_v18  ;;  %v2574_v18 = vld [vmem:[%s3125_s26 + $0x78] sm:$0xff] }
 0x2bf   : > { %v2081_v15 = vpop.f32.mrf.mxu2 }
 0x2c0   : > { %v2082_v26 = vadd.f32 %v3727_v8, %v2081_v15 }
 0x2c2   : > { %v2120_v17 = vadd.f32 %v2562_v38, %v2082_v26 }
 0x2c4   : > { %v2136_v19 = vmax.f32 %v2120_v17, 0.0 }
 0x2c6   : > { %2152 = vst.msk [vmem:[%s3733_s21 + $0x8] sm:$0xff] %vm598_vm0, %v2136_v19  ;;  %v2575_v19 = vld [vmem:[%s3125_s26 + $0x60] sm:$0xff] }
 0x2c9   : > { %v2084_v43 = vpop.f32.mrf.mxu2 }
 0x2ca   : > { %v2085_v20 = vadd.f32 %v3727_v8, %v2084_v43 }
 0x2cc   : > { %v2121_v0 = vadd.f32 %v2563_v22, %v2085_v20 }
 0x2ce   : > { %v2137_v9 = vmax.f32 %v2121_v0, 0.0 }
 0x2d0   : > { %2153 = vst.msk [vmem:[%s3733_s21 + $0x10] sm:$0xff] %vm598_vm0, %v2137_v9  ;;  %v2576_v9 = vld [vmem:[%s3125_s26 + $0x68] sm:$0xff] }
 0x2d1   : > { %v2086_v1 = vpop.f32.mrf.mxu2 }
 0x2d2   : > { %v2087_v14 = vadd.f32 %v3727_v8, %v2086_v1 }
 0x2d4   : > { %v2122_v40 = vadd.f32 %v2564_v54, %v2087_v14 }
 0x2d6   : > { %v2138_v51 = vmax.f32 %v2122_v40, 0.0 }
 0x2d8   : > { %2154 = vst.msk [vmem:[%s3733_s21 + $0x18] sm:$0xff] %vm598_vm0, %v2138_v51 }
 0x2da   : > { %v2089_v6 = vpop.f32.mrf.mxu2 }
 0x2db   : > { %v2090_v31 = vadd.f32 %v3727_v8, %v2089_v6 }
 0x2dd   : > { %v2123_v32 = vadd.f32 %v2565_v35, %v2090_v31 }
 0x2df   : > { %v2139_v50 = vmax.f32 %v2123_v32, 0.0 }
 0x2e1   : > { %2155 = vst.msk [vmem:[%s3733_s21 + $0x20] sm:$0xff] %vm598_vm0, %v2139_v50 }
 0x2e2   : > { %v2091_v45 = vpop.f32.mrf.mxu2 }
 0x2e3   : > { %v2092_v46 = vadd.f32 %v3727_v8, %v2091_v45 }
 0x2e5   : > { %v2124_v63 = vadd.f32 %v2566_v53, %v2092_v46 }
 0x2e7   : > { %v2140_v16 = vmax.f32 %v2124_v63, 0.0 }
 0x2e9   : > { %2156 = vst.msk [vmem:[%s3733_s21 + $0x28] sm:$0xff] %vm598_vm0, %v2140_v16 }
 0x2f7   : > { %v2094_v10 = vpop.f32.mrf.mxu2 }
 0x2f8   : > { %v2095_v44 = vadd.f32 %v3727_v8, %v2094_v10 }
 0x2fa   : > { %v2125_v59 = vadd.f32 %v2567_v23, %v2095_v44 }
 0x2fc   : > { %v2141_v61 = vmax.f32 %v2125_v59, 0.0 }
 0x2fe   : > { %2157 = vst.msk [vmem:[%s3733_s21 + $0x30] sm:$0xff] %vm598_vm0, %v2141_v61 }
 0x2ff   : > { %v2096_v60 = vpop.f32.mrf.mxu2 }
 0x300   : > { %v2097_v24 = vadd.f32 %v3727_v8, %v2096_v60 }
 0x302   : > { %v2126_v33 = vadd.f32 %v2568_v62, %v2097_v24 }
 0x304   : > { %v2142_v12 = vmax.f32 %v2126_v33, 0.0 }
 0x306   : > { %2158 = vst.msk [vmem:[%s3733_s21 + $0x38] sm:$0xff] %vm598_vm0, %v2142_v12 }
 0x309   : > { %v2099_v34 = vpop.f32.mrf.mxu2 }
 0x30a   : > { %v2100_v48 = vadd.f32 %v3727_v8, %v2099_v34 }
 0x30c   : > { %v2127_v39 = vadd.f32 %v2569_v55, %v2100_v48 }
 0x30e   : > { %v2143_v56 = vmax.f32 %v2127_v39, 0.0 }
 0x310   : > { %2159 = vst.msk [vmem:[%s3733_s21 + $0x40] sm:$0xff] %vm598_vm0, %v2143_v56 }
 0x311   : > { %v2101_v29 = vpop.f32.mrf.mxu2 }
 0x312   : > { %v2102_v21 = vadd.f32 %v3727_v8, %v2101_v29 }
 0x314   : > { %v2128_v25 = vadd.f32 %v2570_v2, %v2102_v21 }
 0x316   : > { %v2144_v52 = vmax.f32 %v2128_v25, 0.0 }
 0x318   : > { %2160 = vst.msk [vmem:[%s3733_s21 + $0x48] sm:$0xff] %vm598_vm0, %v2144_v52 }
 0x319   : > { %v2104_v37 = vpop.f32.mrf.mxu2 }
 0x31a   : > { %v2105_v57 = vadd.f32 %v3727_v8, %v2104_v37 }
 0x31c   : > { %v2129_v47 = vadd.f32 %v2571_v4, %v2105_v57 }
 0x31e   : > { %v2145_v11 = vmax.f32 %v2129_v47, 0.0  ;;  %v2114_v28 = vpop.f32.mrf.mxu3 }
 0x31f   : > { %v2115_v41 = vadd.f32 %v3727_v8, %v2114_v28 }
 0x320   : > { %2161 = vst.msk [vmem:[%s3733_s21 + $0x50] sm:$0xff] %vm598_vm0, %v2145_v11 }
 0x321   : > { %v2133_v3 = vadd.f32 %v2572_v49, %v2115_v41  ;;  %v2106_v58 = vpop.f32.mrf.mxu2 }
 0x322   : > { %v2107_v5 = vadd.f32 %v3727_v8, %v2106_v58 }
 0x323   : > { %v2149_v7 = vmax.f32 %v2133_v3, 0.0 }
 0x324   : > { %v2130_v13 = vadd.f32 %v2573_v36, %v2107_v5 }
 0x325   : > { %2165 = vst.msk [vmem:[%s3733_s21 + $0x70] sm:$0xff] %vm598_vm0, %v2149_v7 }
 0x326   : > { %v2146_v30 = vmax.f32 %v2130_v13, 0.0  ;;  %v2116_v27 = vpop.f32.mrf.mxu3 }
 0x327   : > { %v2117_v42 = vadd.f32 %v3727_v8, %v2116_v27 }
 0x328   : > { %2162 = vst.msk [vmem:[%s3733_s21 + $0x58] sm:$0xff] %vm598_vm0, %v2146_v30 }
 0x329   : > { %v2134_v15 = vadd.f32 %v2574_v18, %v2117_v42  ;;  %v2109_v26 = vpop.f32.mrf.mxu2 }
 0x32a   : > { %v2110_v38 = vadd.f32 %v3727_v8, %v2109_v26 }
 0x32b   : > { %v2150_v17 = vmax.f32 %v2134_v15, 0.0 }
 0x32c   : > { %v2131_v43 = vadd.f32 %v2575_v19, %v2110_v38 }
 0x32d   : > { %2166 = vst.msk [vmem:[%s3733_s21 + $0x78] sm:$0xff] %vm598_vm0, %v2150_v17 }
 0x32e   : > { %v2147_v20 = vmax.f32 %v2131_v43, 0.0 }
 0x330   : > { %2163 = vst.msk [vmem:[%s3733_s21 + $0x60] sm:$0xff] %vm598_vm0, %v2147_v20 }
 0x331   : > { %v2111_v22 = vpop.f32.mrf.mxu2 }
 0x332   : > { %v2112_v0 = vadd.f32 %v3727_v8, %v2111_v22 }
 0x334   : > { %v2132_v1 = vadd.f32 %v2576_v9, %v2112_v0 }
 0x336   : > { %v2148_v14 = vmax.f32 %v2132_v1, 0.0 }
 0x338   : > { %2164 = vst.msk [vmem:[%s3733_s21 + $0x68] sm:$0xff] %vm598_vm0, %v2148_v14 }
 0x339   : > { %2694 = shalt.err (!%p2691_p12)
}
 0x33a   : > { %s2833_s25 = smov 128  }
 0x33b   : > { %2417 = dma.vmem_to_hbm [thread:$0]  (%p3055_p4), %s2184_s18, 2048, %s2186_s28, %s2168_s6, %s2833_s25, %s2833_s25, %s2828_s15  }
 0x33c PF: > { %s3952_s21 = sld [smem:[#allocation14_spill]]  ;;  %p2434_p13 = scmp.ge.s32.totalorder %s2821_s22, 2 }
 0x33e   : > { %p2430_p1 = pnand %p2434_p13, %p3059_p6 }
 0x340   : > { %p2431_p2 = pneg %p2430_p1 }
 0x342   : > { %s2200_s19 = sand.u32 1, %s3952_s21  }
 0x343   : > { %s2201_s5 = scalar_lea.sflag [#allocation4], %s2200_s19 }
 0x344   : > { %2764 = dma.done.wait (%p2431_p2), %s2201_s5, 2048  }
 0x345   : > { %2766 = vsyncadd (%p2431_p2), %s2201_s5, 4294965248  ;;  %s28_s22 = sadd.s32 1, %s2821_s22   ;;  %s3955_s8 = sld [smem:[#allocation13_spill]] }
 0x346   : > { %p3820_p11 = scmp.ge.s32.totalorder %s28_s22, 6   ;;  %s3956_s14 = sld [smem:[#allocation23_spill]] }
 0x347   : > { %s3957_s17 = sld [smem:[#allocation15_spill]]  ;;  %s3963_s30 = smov %s2773_s10 }
 0x348   : > { %s3958_s27 = sld [smem:[#allocation24_spill]]  ;;  %s3964_s10 = smov %s2777_s11 }
 0x349   : > { %s3959_s18 = sld [smem:[#allocation18_spill]]  ;;  %s3965_s11 = smov %s3102_s29 }
 0x34a   : > { %s3960_s19 = sld [smem:[#allocation19_spill]]  ;;  %s3966_s12 = smov %s2785_s13 }
 0x34b   : > { %s3961_s20 = sld [smem:[#allocation20_spill]]  ;;  %s3967_s13 = smov %s3955_s8 }
 0x34c   : > { %s3962_s21 = sld [smem:[#allocation21_spill]]  ;;  %s3968_s15 = smov %s2797_s16 }
 0x34d   : > { %s3969_s16 = smov %s3957_s17  ;;  %27 = sbr.rel (!%p3820_p11) target bundleno = 22 (0x16), region = 125 }
 0x34e   : > { %s3970_s17 = smov %s3958_s27 }
 0x352   :  { %2207 = vsyncpa [#allocation3], 1 }
 0x353   :  { %2209 = vsyncpa [#allocation3 + $0x1], 1 }
 0x354   :  { %2210 = vsyncpa [#allocation6], 1 }
 0x355   :  { %2212 = vsyncpa [#allocation6 + $0x1], 1 }
 0x356   :  { %2213 = vsyncpa [#allocation4], 1 }
 0x357   :  { %2215 = vsyncpa [#allocation4 + $0x1], 1 }

</bundles_post_ra>
